<compile_context>
chip_gen: v6e
topology: v6e:2x2x1
jax: 0.10.0
libtpu: 0.0.40
codegen_flags: <defaults>
</compile_context>

<pallas_src>
import functools
import jax
import jax.numpy as jnp
from jax.experimental import pallas as pl
from jax.experimental.pallas import tpu as pltpu

EPS = 1e-5


# ----------------------------- in-kernel helpers -----------------------------

def _layernorm(x, scale, shift):
    # matches torch: mean / var(unbiased=False) over last dim, f32 math
    mean = jnp.mean(x, axis=-1, keepdims=True)
    var = jnp.mean(jnp.square(x - mean), axis=-1, keepdims=True)
    return scale * ((x - mean) * jax.lax.rsqrt(var + EPS)) + shift


def _gelu(x):
    # tanh-approx GELU exactly as in the PyTorch module (f32)
    c = jnp.sqrt(jnp.float32(2.0 / jnp.pi))
    return 0.5 * x * (1.0 + jnp.tanh(c * (x + 0.044715 * x * x * x)))


# ------------------------ fused transformer-block stack -----------------------

def blocks_kernel(num_heads,
                  x_ref, ln1s, ln1b, wqkv, wo, bo,
                  ln2s, ln2b, w1, b1, w2, b2, out_ref):
    l = pl.program_id(1)

    # layer 0: seed the resident activation block from the embedded input
    @pl.when(l == 0)
    def _():
        out_ref[...] = x_ref[...]

    nb, T, E = out_ref.shape
    M = nb * T
    H = num_heads
    hd = E // H
    scale = 1.0 / jnp.sqrt(jnp.float32(hd))

    x = out_ref[...].reshape(M, E)                     # f32 activations, (B*T, E)

    # ---- attention sub-block: x + Wo(MHA(LN1(x))) ----
    h = _layernorm(x, ln1s[0], ln1b[0])
    qkv = jnp.dot(h.astype(jnp.bfloat16), wqkv[0],
                  preferred_element_type=jnp.float32)  # (M, 3E), fused QKV matmul

    def split_heads(m):                                # (M, E) -> (nb*H, T, hd)
        return jnp.swapaxes(m.reshape(nb, T, H, hd), 1, 2).reshape(nb * H, T, hd)

    qh = split_heads(qkv[:, 0 * E:1 * E]).astype(jnp.bfloat16)
    kh = split_heads(qkv[:, 1 * E:2 * E]).astype(jnp.bfloat16)
    vh = split_heads(qkv[:, 2 * E:3 * E]).astype(jnp.bfloat16)

    s = jnp.einsum('bqd,bkd->bqk', qh, kh,
                   preferred_element_type=jnp.float32) * scale      # (nb*H, T, T)
    row = jax.lax.broadcasted_iota(jnp.int32, (T, T), 0)
    col = jax.lax.broadcasted_iota(jnp.int32, (T, T), 1)
    s = jnp.where((col <= row)[None], s, -jnp.inf)                   # causal mask
    s = s - jnp.max(s, axis=-1, keepdims=True)
    p = jnp.exp(s)
    p = p * pl.reciprocal(jnp.sum(p, axis=-1, keepdims=True), approx=True)

    ctx = jnp.einsum('bqk,bkd->bqd', p.astype(jnp.bfloat16), vh,
                     preferred_element_type=jnp.float32)             # (nb*H, T, hd)
    ctx = jnp.swapaxes(ctx.reshape(nb, H, T, hd), 1, 2).reshape(M, E)

    attn = jnp.dot(ctx.astype(jnp.bfloat16), wo[0],
                   preferred_element_type=jnp.float32) + bo[0]
    x = x + attn                                       # dropout = identity

    # ---- feed-forward sub-block: x + W2(GELU(W1(LN2(x)))) ----
    h2 = _layernorm(x, ln2s[0], ln2b[0])
    f = jnp.dot(h2.astype(jnp.bfloat16), w1[0],
                preferred_element_type=jnp.float32) + b1[0]
    f = _gelu(f)
    f = jnp.dot(f.astype(jnp.bfloat16), w2[0],
                preferred_element_type=jnp.float32) + b2[0]
    x = x + f                                          # dropout = identity

    out_ref[...] = x.reshape(nb, T, E)


def transformer_blocks(x, p, num_heads):
    B, T, E = x.shape
    L = p["wqkv"].shape[0]
    F = p["w1"].shape[2]

    # batch tile: aim for ~256 activation rows (B*T) per grid step
    bt = min(B, max(1, 256 // T))
    while B % bt:
        bt -= 1

    def wspec(shape):
        # stacked per-layer weight: block (1, *shape), indexed by the layer axis
        return pl.BlockSpec((1,) + shape, lambda b, l: (l,) + (0,) * len(shape))

    in_specs = [
        pl.BlockSpec((bt, T, E), lambda b, l: (b, 0, 0)),   # x (resident across l)
        wspec((1, E)), wspec((1, E)),                       # ln1 scale/shift
        wspec((E, 3 * E)),                                  # fused Wqkv
        wspec((E, E)), wspec((1, E)),                       # Wo, bo
        wspec((1, E)), wspec((1, E)),                       # ln2 scale/shift
        wspec((E, F)), wspec((1, F)),                       # W1, b1
        wspec((F, E)), wspec((1, E)),                       # W2, b2
    ]
    return pl.pallas_call(
        functools.partial(blocks_kernel, num_heads),
        out_shape=jax.ShapeDtypeStruct((B, T, E), jnp.float32),
        grid=(B // bt, L),
        in_specs=in_specs,
        out_specs=pl.BlockSpec((bt, T, E), lambda b, l: (b, 0, 0)),  # resident acc
        compiler_params=pltpu.CompilerParams(
            dimension_semantics=("parallel", "arbitrary")),
    )(x, p["ln1_s"], p["ln1_b"], p["wqkv"], p["wo"], p["bo"],
      p["ln2_s"], p["ln2_b"], p["w1"], p["b1"], p["w2"], p["b2"])


# ------------------------- final norm + output head ---------------------------

def head_kernel(x_ref, fns_ref, fnb_ref, wh_ref, out_ref):
    x = x_ref[...]                                     # (tm, E) f32
    h = _layernorm(x, fns_ref[...], fnb_ref[...])
    out_ref[...] = jnp.dot(h.astype(jnp.bfloat16), wh_ref[...],
                           preferred_element_type=jnp.float32)


def final_norm_head(x, fn_s, fn_b, w_head):
    B, T, E = x.shape
    M = B * T
    V = w_head.shape[1]
    x2 = x.reshape(M, E)                               # fold batch+seq into M

    tm = 256 if M % 256 == 0 else M                    # M tile (MXU-row aligned)
    tv = 512 if V % 512 == 0 else (128 if V % 128 == 0 else V)  # lane-dense V tile

    out = pl.pallas_call(
        head_kernel,
        out_shape=jax.ShapeDtypeStruct((M, V), jnp.float32),
        grid=(M // tm, V // tv),
        in_specs=[
            pl.BlockSpec((tm, E), lambda i, j: (i, 0)),
            pl.BlockSpec((1, E), lambda i, j: (0, 0)),
            pl.BlockSpec((1, E), lambda i, j: (0, 0)),
            pl.BlockSpec((E, tv), lambda i, j: (0, j)),
        ],
        out_specs=pl.BlockSpec((tm, tv), lambda i, j: (i, j)),
        compiler_params=pltpu.CompilerParams(
            dimension_semantics=("parallel", "parallel")),
    )(x2, fn_s, fn_b, w_head)
    return out.reshape(B, T, V)


# ------------------------------- model wrapper ---------------------------------

def init_params(key, cfg):
    E, V, C = cfg["emb_dim"], cfg["vocab_size"], cfg["context_length"]
    L, F = cfg["n_layers"], 4 * cfg["emb_dim"]
    ks = jax.random.split(key, 8)
    nrm = lambda k, shape: 0.02 * jax.random.normal(k, shape, jnp.float32)

    return {
        "tok_emb": jax.random.normal(ks[0], (V, E), jnp.float32),  # torch Embedding ~ N(0,1)
        "pos_emb": jax.random.normal(ks[1], (C, E), jnp.float32),
        "fn_s": jnp.ones((1, E), jnp.float32),
        "fn_b": jnp.zeros((1, E), jnp.float32),
        "w_head": nrm(ks[2], (E, V)).astype(jnp.bfloat16),
        # stacked per-layer weights (leading L axis); matmul weights in bf16
        "ln1_s": jnp.ones((L, 1, E), jnp.float32),
        "ln1_b": jnp.zeros((L, 1, E), jnp.float32),
        "wqkv": nrm(ks[3], (L, E, 3 * E)).astype(jnp.bfloat16),
        "wo": nrm(ks[4], (L, E, E)).astype(jnp.bfloat16),
        "bo": jnp.zeros((L, 1, E), jnp.float32),
        "ln2_s": jnp.ones((L, 1, E), jnp.float32),
        "ln2_b": jnp.zeros((L, 1, E), jnp.float32),
        "w1": nrm(ks[5], (L, E, F)).astype(jnp.bfloat16),
        "b1": jnp.zeros((L, 1, F), jnp.float32),
        "w2": nrm(ks[6], (L, F, E)).astype(jnp.bfloat16),
        "b2": jnp.zeros((L, 1, E), jnp.float32),
    }


def gpt_forward(params, token_ids, cfg):
    B, T = token_ids.shape
    # embedding lookups are gather glue in plain JAX
    tok = jnp.take(params["tok_emb"], token_ids, axis=0)          # (B, T, E)
    pos = params["pos_emb"][:T][None, :, :]                       # (1, T, E)
    x = (tok + pos).astype(jnp.float32)                           # drop_emb = identity
    x = transformer_blocks(x, params, cfg["n_heads"])             # all L layers fused
    return final_norm_head(x, params["fn_s"], params["fn_b"], params["w_head"])


# ------------------------------------ main --------------------------------------

if __name__ == "__main__":
    cfg = {
        "vocab_size": 128,
        "context_length": 8,
        "emb_dim": 32,
        "n_heads": 4,
        "n_layers": 2,
        "drop_rate": 0.0,   # dropout is identity in this forward implementation
        "qkv_bias": False,
    }
    batch_size, seq_len = 2, 8

    key = jax.random.PRNGKey(0)
    pkey, dkey = jax.random.split(key)
    params = init_params(pkey, cfg)
    token_ids = jax.random.randint(dkey, (batch_size, seq_len), 0,
                                   cfg["vocab_size"], dtype=jnp.int32)

    logits = gpt_forward(params, token_ids, cfg)
    jax.block_until_ready(logits)
    assert logits.shape == (batch_size, seq_len, cfg["vocab_size"])
    assert logits.dtype == jnp.float32
    print("KERNEL_OK")
</pallas_src>

<mosaic_0001>
module attributes {stable_mosaic.version = 11 : i64} {
  func.func @blocks_kernel(%arg0: i32, %arg1: i32, %arg2: memref<2x8x32xf32, #tpu.memory_space<vmem>>, %arg3: memref<1x1x32xf32, #tpu.memory_space<vmem>>, %arg4: memref<1x1x32xf32, #tpu.memory_space<vmem>>, %arg5: memref<1x32x96xbf16, #tpu.memory_space<vmem>>, %arg6: memref<1x32x32xbf16, #tpu.memory_space<vmem>>, %arg7: memref<1x1x32xf32, #tpu.memory_space<vmem>>, %arg8: memref<1x1x32xf32, #tpu.memory_space<vmem>>, %arg9: memref<1x1x32xf32, #tpu.memory_space<vmem>>, %arg10: memref<1x32x128xbf16, #tpu.memory_space<vmem>>, %arg11: memref<1x1x128xf32, #tpu.memory_space<vmem>>, %arg12: memref<1x128x32xbf16, #tpu.memory_space<vmem>>, %arg13: memref<1x1x32xf32, #tpu.memory_space<vmem>>, %arg14: memref<2x8x32xf32, #tpu.memory_space<vmem>>) attributes {dimension_semantics = [#tpu.dimension_semantics<parallel>, #tpu.dimension_semantics<arbitrary>], iteration_bounds = array<i64: 1, 2>, scalar_prefetch = 0 : i64, scratch_operands = 0 : i64, tpu.core_type = #tpu.core_type<tc>, window_params = [{transform_indices = @transform_0, window_bounds = array<i64: 2, 8, 32>}, {transform_indices = @transform_1, window_bounds = array<i64: 1, 1, 32>}, {transform_indices = @transform_2, window_bounds = array<i64: 1, 1, 32>}, {transform_indices = @transform_3, window_bounds = array<i64: 1, 32, 96>}, {transform_indices = @transform_4, window_bounds = array<i64: 1, 32, 32>}, {transform_indices = @transform_5, window_bounds = array<i64: 1, 1, 32>}, {transform_indices = @transform_6, window_bounds = array<i64: 1, 1, 32>}, {transform_indices = @transform_7, window_bounds = array<i64: 1, 1, 32>}, {transform_indices = @transform_8, window_bounds = array<i64: 1, 32, 128>}, {transform_indices = @transform_9, window_bounds = array<i64: 1, 1, 128>}, {transform_indices = @transform_10, window_bounds = array<i64: 1, 128, 32>}, {transform_indices = @transform_11, window_bounds = array<i64: 1, 1, 32>}, {transform_indices = @transform_12, window_bounds = array<i64: 2, 8, 32>}]} {
    %c0_i32 = arith.constant 0 : i32
    %0 = arith.cmpi eq, %arg1, %c0_i32 : i32
    %1 = arith.extui %0 : i1 to i32
    %c0_i32_0 = arith.constant 0 : i32
    %2 = arith.cmpi ne, %1, %c0_i32_0 : i32
    scf.if %2 {
      %c0_63 = arith.constant 0 : index
      %c0_64 = arith.constant 0 : index
      %c0_65 = arith.constant 0 : index
      %146 = vector.load %arg2[%c0_63, %c0_64, %c0_65] : memref<2x8x32xf32, #tpu.memory_space<vmem>>, vector<2x8x32xf32>
      %c0_66 = arith.constant 0 : index
      %c0_67 = arith.constant 0 : index
      %c0_68 = arith.constant 0 : index
      %147 = vector.load %arg14[%c0_66, %c0_67, %c0_68] : memref<2x8x32xf32, #tpu.memory_space<vmem>>, vector<2x8x32xf32>
      tpu.vector_store %arg14[%c0_66, %c0_67, %c0_68], %146 {strides = array<i32>} : memref<2x8x32xf32, #tpu.memory_space<vmem>>, vector<2x8x32xf32>,
    } else {
    }
    %cst = arith.constant 8.000000e+00 : f32
    %3 = math.sqrt %cst : f32
    %cst_1 = arith.constant 1.000000e+00 : f32
    %4 = arith.divf %cst_1, %3 : f32
    %c0 = arith.constant 0 : index
    %c0_2 = arith.constant 0 : index
    %c0_3 = arith.constant 0 : index
    %5 = vector.load %arg14[%c0, %c0_2, %c0_3] : memref<2x8x32xf32, #tpu.memory_space<vmem>>, vector<2x8x32xf32>
    %6 = vector.shape_cast %5 : vector<2x8x32xf32> to vector<16x32xf32>
    %c0_4 = arith.constant 0 : index
    %c0_5 = arith.constant 0 : index
    %c0_6 = arith.constant 0 : index
    %7 = vector.load %arg3[%c0_4, %c0_5, %c0_6] : memref<1x1x32xf32, #tpu.memory_space<vmem>>, vector<1x1x32xf32>
    %8 = vector.shape_cast %7 : vector<1x1x32xf32> to vector<1x32xf32>
    %c0_7 = arith.constant 0 : index
    %c0_8 = arith.constant 0 : index
    %c0_9 = arith.constant 0 : index
    %9 = vector.load %arg4[%c0_7, %c0_8, %c0_9] : memref<1x1x32xf32, #tpu.memory_space<vmem>>, vector<1x1x32xf32>
    %10 = vector.shape_cast %9 : vector<1x1x32xf32> to vector<1x32xf32>
    %cst_10 = arith.constant dense<0.000000e+00> : vector<16xf32>
    %11 = vector.multi_reduction <add>, %6, %cst_10 [1] : vector<16x32xf32> to vector<16xf32>
    %12 = vector.shape_cast %11 : vector<16xf32> to vector<16x1xf32>
    %cst_11 = arith.constant 3.200000e+01 : f32
    %13 = vector.broadcast %cst_11 : f32 to vector<16x1xf32>
    %14 = arith.divf %12, %13 : vector<16x1xf32>
    %15 = vector.broadcast %14 : vector<16x1xf32> to vector<16x32xf32>
    %16 = arith.subf %6, %15 : vector<16x32xf32>
    %17 = arith.mulf %16, %16 : vector<16x32xf32>
    %cst_12 = arith.constant dense<0.000000e+00> : vector<16xf32>
    %18 = vector.multi_reduction <add>, %17, %cst_12 [1] : vector<16x32xf32> to vector<16xf32>
    %19 = vector.shape_cast %18 : vector<16xf32> to vector<16x1xf32>
    %cst_13 = arith.constant 3.200000e+01 : f32
    %20 = vector.broadcast %cst_13 : f32 to vector<16x1xf32>
    %21 = arith.divf %19, %20 : vector<16x1xf32>
    %22 = vector.broadcast %14 : vector<16x1xf32> to vector<16x32xf32>
    %23 = arith.subf %6, %22 : vector<16x32xf32>
    %cst_14 = arith.constant 9.99999974E-6 : f32
    %24 = vector.broadcast %cst_14 : f32 to vector<16x1xf32>
    %25 = arith.addf %21, %24 : vector<16x1xf32>
    %26 = math.rsqrt %25 : vector<16x1xf32>
    %27 = vector.broadcast %26 : vector<16x1xf32> to vector<16x32xf32>
    %28 = arith.mulf %23, %27 : vector<16x32xf32>
    %29 = vector.broadcast %8 : vector<1x32xf32> to vector<16x32xf32>
    %30 = arith.mulf %29, %28 : vector<16x32xf32>
    %31 = vector.broadcast %10 : vector<1x32xf32> to vector<16x32xf32>
    %32 = arith.addf %30, %31 : vector<16x32xf32>
    %33 = arith.truncf %32 : vector<16x32xf32> to vector<16x32xbf16>
    %c0_15 = arith.constant 0 : index
    %c0_16 = arith.constant 0 : index
    %c0_17 = arith.constant 0 : index
    %34 = vector.load %arg5[%c0_15, %c0_16, %c0_17] : memref<1x32x96xbf16, #tpu.memory_space<vmem>>, vector<1x32x96xbf16>
    %35 = vector.shape_cast %34 : vector<1x32x96xbf16> to vector<32x96xbf16>
    %cst_18 = arith.constant dense<0.000000e+00> : vector<16x96xf32>
    %36 = tpu.matmul %33, %35, %cst_18 {dimension_numbers = #tpu.dot_dimension_numbers<[1], [0], [0], [1], [0, 0, 1, 1], [], []>} : vector<16x32xbf16>, vector<32x96xbf16>, vector<16x96xf32> -> vector<16x96xf32>
    %37 = vector.extract_strided_slice %36 {offsets = [0, 0], sizes = [16, 32], strides = [1, 1]} : vector<16x96xf32> to vector<16x32xf32>
    %38 = vector.shape_cast %37 : vector<16x32xf32> to vector<2x8x4x8xf32>
    %39 = tpu.transpose %38, [0, 2, 1, 3] : vector<2x8x4x8xf32> -> vector<2x4x8x8xf32>
    %40 = vector.shape_cast %39 : vector<2x4x8x8xf32> to vector<8x8x8xf32>
    %41 = arith.truncf %40 : vector<8x8x8xf32> to vector<8x8x8xbf16>
    %42 = vector.extract_strided_slice %36 {offsets = [0, 32], sizes = [16, 32], strides = [1, 1]} : vector<16x96xf32> to vector<16x32xf32>
    %43 = vector.shape_cast %42 : vector<16x32xf32> to vector<2x8x4x8xf32>
    %44 = tpu.transpose %43, [0, 2, 1, 3] : vector<2x8x4x8xf32> -> vector<2x4x8x8xf32>
    %45 = vector.shape_cast %44 : vector<2x4x8x8xf32> to vector<8x8x8xf32>
    %46 = arith.truncf %45 : vector<8x8x8xf32> to vector<8x8x8xbf16>
    %47 = vector.extract_strided_slice %36 {offsets = [0, 64], sizes = [16, 32], strides = [1, 1]} : vector<16x96xf32> to vector<16x32xf32>
    %48 = vector.shape_cast %47 : vector<16x32xf32> to vector<2x8x4x8xf32>
    %49 = tpu.transpose %48, [0, 2, 1, 3] : vector<2x8x4x8xf32> -> vector<2x4x8x8xf32>
    %50 = vector.shape_cast %49 : vector<2x4x8x8xf32> to vector<8x8x8xf32>
    %51 = arith.truncf %50 : vector<8x8x8xf32> to vector<8x8x8xbf16>
    "tpu.trace_start"() <{level = 10 : i32, message = "bqd,bkd->bqk"}> : () -> ()
    %cst_19 = arith.constant dense<0.000000e+00> : vector<8x8x8xf32>
    %52 = tpu.matmul %41, %46, %cst_19 {dimension_numbers = #tpu.dot_dimension_numbers<[2], [2], [1], [1], [0, 0, 0, 1, 1, 1], [0], [0]>} : vector<8x8x8xbf16>, vector<8x8x8xbf16>, vector<8x8x8xf32> -> vector<8x8x8xf32>
    "tpu.trace_stop"() : () -> ()
    %53 = vector.broadcast %4 : f32 to vector<8x8x8xf32>
    %54 = arith.mulf %52, %53 : vector<8x8x8xf32>
    %55 = tpu.iota {dimensions = array<i32: 0>} : vector<8x8xi32>
    %56 = tpu.iota {dimensions = array<i32: 1>} : vector<8x8xi32>
    %57 = arith.cmpi sle, %56, %55 : vector<8x8xi32>
    %58 = vector.shape_cast %57 : vector<8x8xi1> to vector<1x8x8xi1>
    %cst_20 = arith.constant 0xFF800000 : f32
    %59 = vector.shape_cast %58 : vector<1x8x8xi1> to vector<1x8x8xi1>
    %60 = vector.broadcast %59 : vector<1x8x8xi1> to vector<8x8x8xi1>
    %61 = vector.broadcast %cst_20 : f32 to vector<8x8x8xf32>
    %62 = arith.select %60, %54, %61 : vector<8x8x8xi1>, vector<8x8x8xf32>
    %cst_21 = arith.constant dense<0xFF800000> : vector<8x8xf32>
    %63 = vector.multi_reduction <maximumf>, %62, %cst_21 [2] : vector<8x8x8xf32> to vector<8x8xf32>
    %64 = vector.shape_cast %63 : vector<8x8xf32> to vector<8x8x1xf32>
    %65 = vector.broadcast %64 : vector<8x8x1xf32> to vector<8x8x8xf32>
    %66 = arith.subf %62, %65 : vector<8x8x8xf32>
    %67 = math.exp %66 : vector<8x8x8xf32>
    %cst_22 = arith.constant dense<0.000000e+00> : vector<8x8xf32>
    %68 = vector.multi_reduction <add>, %67, %cst_22 [2] : vector<8x8x8xf32> to vector<8x8xf32>
    %69 = vector.shape_cast %68 : vector<8x8xf32> to vector<8x8x1xf32>
    %70 = tpu.reciprocal %69 {approx = true} : vector<8x8x1xf32> -> vector<8x8x1xf32>
    %71 = vector.broadcast %70 : vector<8x8x1xf32> to vector<8x8x8xf32>
    %72 = arith.mulf %67, %71 : vector<8x8x8xf32>
    %73 = arith.truncf %72 : vector<8x8x8xf32> to vector<8x8x8xbf16>
    "tpu.trace_start"() <{level = 10 : i32, message = "bqk,bkd->bqd"}> : () -> ()
    %cst_23 = arith.constant dense<0.000000e+00> : vector<8x8x8xf32>
    %74 = tpu.matmul %73, %51, %cst_23 {dimension_numbers = #tpu.dot_dimension_numbers<[2], [1], [1], [2], [0, 0, 0, 1, 1, 2], [0], [0]>} : vector<8x8x8xbf16>, vector<8x8x8xbf16>, vector<8x8x8xf32> -> vector<8x8x8xf32>
    "tpu.trace_stop"() : () -> ()
    %75 = vector.shape_cast %74 : vector<8x8x8xf32> to vector<2x4x8x8xf32>
    %76 = tpu.transpose %75, [0, 2, 1, 3] : vector<2x4x8x8xf32> -> vector<2x8x4x8xf32>
    %77 = vector.shape_cast %76 : vector<2x8x4x8xf32> to vector<16x32xf32>
    %78 = arith.truncf %77 : vector<16x32xf32> to vector<16x32xbf16>
    %c0_24 = arith.constant 0 : index
    %c0_25 = arith.constant 0 : index
    %c0_26 = arith.constant 0 : index
    %79 = vector.load %arg6[%c0_24, %c0_25, %c0_26] : memref<1x32x32xbf16, #tpu.memory_space<vmem>>, vector<1x32x32xbf16>
    %80 = vector.shape_cast %79 : vector<1x32x32xbf16> to vector<32x32xbf16>
    %cst_27 = arith.constant dense<0.000000e+00> : vector<16x32xf32>
    %81 = tpu.matmul %78, %80, %cst_27 {dimension_numbers = #tpu.dot_dimension_numbers<[1], [0], [0], [1], [0, 0, 1, 1], [], []>} : vector<16x32xbf16>, vector<32x32xbf16>, vector<16x32xf32> -> vector<16x32xf32>
    %c0_28 = arith.constant 0 : index
    %c0_29 = arith.constant 0 : index
    %c0_30 = arith.constant 0 : index
    %82 = vector.load %arg7[%c0_28, %c0_29, %c0_30] : memref<1x1x32xf32, #tpu.memory_space<vmem>>, vector<1x1x32xf32>
    %83 = vector.shape_cast %82 : vector<1x1x32xf32> to vector<1x32xf32>
    %84 = vector.broadcast %83 : vector<1x32xf32> to vector<16x32xf32>
    %85 = arith.addf %81, %84 : vector<16x32xf32>
    %86 = arith.addf %6, %85 : vector<16x32xf32>
    %c0_31 = arith.constant 0 : index
    %c0_32 = arith.constant 0 : index
    %c0_33 = arith.constant 0 : index
    %87 = vector.load %arg8[%c0_31, %c0_32, %c0_33] : memref<1x1x32xf32, #tpu.memory_space<vmem>>, vector<1x1x32xf32>
    %88 = vector.shape_cast %87 : vector<1x1x32xf32> to vector<1x32xf32>
    %c0_34 = arith.constant 0 : index
    %c0_35 = arith.constant 0 : index
    %c0_36 = arith.constant 0 : index
    %89 = vector.load %arg9[%c0_34, %c0_35, %c0_36] : memref<1x1x32xf32, #tpu.memory_space<vmem>>, vector<1x1x32xf32>
    %90 = vector.shape_cast %89 : vector<1x1x32xf32> to vector<1x32xf32>
    %cst_37 = arith.constant dense<0.000000e+00> : vector<16xf32>
    %91 = vector.multi_reduction <add>, %86, %cst_37 [1] : vector<16x32xf32> to vector<16xf32>
    %92 = vector.shape_cast %91 : vector<16xf32> to vector<16x1xf32>
    %cst_38 = arith.constant 3.200000e+01 : f32
    %93 = vector.broadcast %cst_38 : f32 to vector<16x1xf32>
    %94 = arith.divf %92, %93 : vector<16x1xf32>
    %95 = vector.broadcast %94 : vector<16x1xf32> to vector<16x32xf32>
    %96 = arith.subf %86, %95 : vector<16x32xf32>
    %97 = arith.mulf %96, %96 : vector<16x32xf32>
    %cst_39 = arith.constant dense<0.000000e+00> : vector<16xf32>
    %98 = vector.multi_reduction <add>, %97, %cst_39 [1] : vector<16x32xf32> to vector<16xf32>
    %99 = vector.shape_cast %98 : vector<16xf32> to vector<16x1xf32>
    %cst_40 = arith.constant 3.200000e+01 : f32
    %100 = vector.broadcast %cst_40 : f32 to vector<16x1xf32>
    %101 = arith.divf %99, %100 : vector<16x1xf32>
    %102 = vector.broadcast %94 : vector<16x1xf32> to vector<16x32xf32>
    %103 = arith.subf %86, %102 : vector<16x32xf32>
    %cst_41 = arith.constant 9.99999974E-6 : f32
    %104 = vector.broadcast %cst_41 : f32 to vector<16x1xf32>
    %105 = arith.addf %101, %104 : vector<16x1xf32>
    %106 = math.rsqrt %105 : vector<16x1xf32>
    %107 = vector.broadcast %106 : vector<16x1xf32> to vector<16x32xf32>
    %108 = arith.mulf %103, %107 : vector<16x32xf32>
    %109 = vector.broadcast %88 : vector<1x32xf32> to vector<16x32xf32>
    %110 = arith.mulf %109, %108 : vector<16x32xf32>
    %111 = vector.broadcast %90 : vector<1x32xf32> to vector<16x32xf32>
    %112 = arith.addf %110, %111 : vector<16x32xf32>
    %113 = arith.truncf %112 : vector<16x32xf32> to vector<16x32xbf16>
    %c0_42 = arith.constant 0 : index
    %c0_43 = arith.constant 0 : index
    %c0_44 = arith.constant 0 : index
    %114 = vector.load %arg10[%c0_42, %c0_43, %c0_44] : memref<1x32x128xbf16, #tpu.memory_space<vmem>>, vector<1x32x128xbf16>
    %115 = vector.shape_cast %114 : vector<1x32x128xbf16> to vector<32x128xbf16>
    %cst_45 = arith.constant dense<0.000000e+00> : vector<16x128xf32>
    %116 = tpu.matmul %113, %115, %cst_45 {dimension_numbers = #tpu.dot_dimension_numbers<[1], [0], [0], [1], [0, 0, 1, 1], [], []>} : vector<16x32xbf16>, vector<32x128xbf16>, vector<16x128xf32> -> vector<16x128xf32>
    %c0_46 = arith.constant 0 : index
    %c0_47 = arith.constant 0 : index
    %c0_48 = arith.constant 0 : index
    %117 = vector.load %arg11[%c0_46, %c0_47, %c0_48] : memref<1x1x128xf32, #tpu.memory_space<vmem>>, vector<1x1x128xf32>
    %118 = vector.shape_cast %117 : vector<1x1x128xf32> to vector<1x128xf32>
    %119 = vector.broadcast %118 : vector<1x128xf32> to vector<16x128xf32>
    %120 = arith.addf %116, %119 : vector<16x128xf32>
    %cst_49 = arith.constant 0.636619746 : f32
    %121 = math.sqrt %cst_49 : f32
    %cst_50 = arith.constant 5.000000e-01 : f32
    %122 = vector.broadcast %cst_50 : f32 to vector<16x128xf32>
    %123 = arith.mulf %122, %120 : vector<16x128xf32>
    %cst_51 = arith.constant 4.471500e-02 : f32
    %124 = vector.broadcast %cst_51 : f32 to vector<16x128xf32>
    %125 = arith.mulf %124, %120 : vector<16x128xf32>
    %126 = arith.mulf %125, %120 : vector<16x128xf32>
    %127 = arith.mulf %126, %120 : vector<16x128xf32>
    %128 = arith.addf %120, %127 : vector<16x128xf32>
    %129 = vector.broadcast %121 : f32 to vector<16x128xf32>
    %130 = arith.mulf %129, %128 : vector<16x128xf32>
    %131 = math.tanh %130 : vector<16x128xf32>
    %cst_52 = arith.constant 1.000000e+00 : f32
    %132 = vector.broadcast %cst_52 : f32 to vector<16x128xf32>
    %133 = arith.addf %132, %131 : vector<16x128xf32>
    %134 = arith.mulf %123, %133 : vector<16x128xf32>
    %135 = arith.truncf %134 : vector<16x128xf32> to vector<16x128xbf16>
    %c0_53 = arith.constant 0 : index
    %c0_54 = arith.constant 0 : index
    %c0_55 = arith.constant 0 : index
    %136 = vector.load %arg12[%c0_53, %c0_54, %c0_55] : memref<1x128x32xbf16, #tpu.memory_space<vmem>>, vector<1x128x32xbf16>
    %137 = vector.shape_cast %136 : vector<1x128x32xbf16> to vector<128x32xbf16>
    %cst_56 = arith.constant dense<0.000000e+00> : vector<16x32xf32>
    %138 = tpu.matmul %135, %137, %cst_56 {dimension_numbers = #tpu.dot_dimension_numbers<[1], [0], [0], [1], [0, 0, 1, 1], [], []>} : vector<16x128xbf16>, vector<128x32xbf16>, vector<16x32xf32> -> vector<16x32xf32>
    %c0_57 = arith.constant 0 : index
    %c0_58 = arith.constant 0 : index
    %c0_59 = arith.constant 0 : index
    %139 = vector.load %arg13[%c0_57, %c0_58, %c0_59] : memref<1x1x32xf32, #tpu.memory_space<vmem>>, vector<1x1x32xf32>
    %140 = vector.shape_cast %139 : vector<1x1x32xf32> to vector<1x32xf32>
    %141 = vector.broadcast %140 : vector<1x32xf32> to vector<16x32xf32>
    %142 = arith.addf %138, %141 : vector<16x32xf32>
    %143 = arith.addf %86, %142 : vector<16x32xf32>
    %144 = vector.shape_cast %143 : vector<16x32xf32> to vector<2x8x32xf32>
    %c0_60 = arith.constant 0 : index
    %c0_61 = arith.constant 0 : index
    %c0_62 = arith.constant 0 : index
    %145 = vector.load %arg14[%c0_60, %c0_61, %c0_62] : memref<2x8x32xf32, #tpu.memory_space<vmem>>, vector<2x8x32xf32>
    tpu.vector_store %arg14[%c0_60, %c0_61, %c0_62], %144 {strides = array<i32>} : memref<2x8x32xf32, #tpu.memory_space<vmem>>, vector<2x8x32xf32>,
    return
  }
  func.func @transform_0(%arg0: i32, %arg1: i32) -> (i32, i32, i32) {
    %c0_i32 = arith.constant 0 : i32
    %c0_i32_0 = arith.constant 0 : i32
    %c0_i32_1 = arith.constant 0 : i32
    return %arg0, %c0_i32, %c0_i32_0 : i32, i32, i32
  }
  func.func @transform_1(%arg0: i32, %arg1: i32) -> (i32, i32, i32) {
    %c0_i32 = arith.constant 0 : i32
    %c0_i32_0 = arith.constant 0 : i32
    %c0_i32_1 = arith.constant 0 : i32
    return %arg1, %c0_i32, %c0_i32_0 : i32, i32, i32
  }
  func.func @transform_2(%arg0: i32, %arg1: i32) -> (i32, i32, i32) {
    %c0_i32 = arith.constant 0 : i32
    %c0_i32_0 = arith.constant 0 : i32
    %c0_i32_1 = arith.constant 0 : i32
    return %arg1, %c0_i32, %c0_i32_0 : i32, i32, i32
  }
  func.func @transform_3(%arg0: i32, %arg1: i32) -> (i32, i32, i32) {
    %c0_i32 = arith.constant 0 : i32
    %c0_i32_0 = arith.constant 0 : i32
    %c0_i32_1 = arith.constant 0 : i32
    return %arg1, %c0_i32, %c0_i32_0 : i32, i32, i32
  }
  func.func @transform_4(%arg0: i32, %arg1: i32) -> (i32, i32, i32) {
    %c0_i32 = arith.constant 0 : i32
    %c0_i32_0 = arith.constant 0 : i32
    %c0_i32_1 = arith.constant 0 : i32
    return %arg1, %c0_i32, %c0_i32_0 : i32, i32, i32
  }
  func.func @transform_5(%arg0: i32, %arg1: i32) -> (i32, i32, i32) {
    %c0_i32 = arith.constant 0 : i32
    %c0_i32_0 = arith.constant 0 : i32
    %c0_i32_1 = arith.constant 0 : i32
    return %arg1, %c0_i32, %c0_i32_0 : i32, i32, i32
  }
  func.func @transform_6(%arg0: i32, %arg1: i32) -> (i32, i32, i32) {
    %c0_i32 = arith.constant 0 : i32
    %c0_i32_0 = arith.constant 0 : i32
    %c0_i32_1 = arith.constant 0 : i32
    return %arg1, %c0_i32, %c0_i32_0 : i32, i32, i32
  }
  func.func @transform_7(%arg0: i32, %arg1: i32) -> (i32, i32, i32) {
    %c0_i32 = arith.constant 0 : i32
    %c0_i32_0 = arith.constant 0 : i32
    %c0_i32_1 = arith.constant 0 : i32
    return %arg1, %c0_i32, %c0_i32_0 : i32, i32, i32
  }
  func.func @transform_8(%arg0: i32, %arg1: i32) -> (i32, i32, i32) {
    %c0_i32 = arith.constant 0 : i32
    %c0_i32_0 = arith.constant 0 : i32
    %c0_i32_1 = arith.constant 0 : i32
    return %arg1, %c0_i32, %c0_i32_0 : i32, i32, i32
  }
  func.func @transform_9(%arg0: i32, %arg1: i32) -> (i32, i32, i32) {
    %c0_i32 = arith.constant 0 : i32
    %c0_i32_0 = arith.constant 0 : i32
    %c0_i32_1 = arith.constant 0 : i32
    return %arg1, %c0_i32, %c0_i32_0 : i32, i32, i32
  }
  func.func @transform_10(%arg0: i32, %arg1: i32) -> (i32, i32, i32) {
    %c0_i32 = arith.constant 0 : i32
    %c0_i32_0 = arith.constant 0 : i32
    %c0_i32_1 = arith.constant 0 : i32
    return %arg1, %c0_i32, %c0_i32_0 : i32, i32, i32
  }
  func.func @transform_11(%arg0: i32, %arg1: i32) -> (i32, i32, i32) {
    %c0_i32 = arith.constant 0 : i32
    %c0_i32_0 = arith.constant 0 : i32
    %c0_i32_1 = arith.constant 0 : i32
    return %arg1, %c0_i32, %c0_i32_0 : i32, i32, i32
  }
  func.func @transform_12(%arg0: i32, %arg1: i32) -> (i32, i32, i32) {
    %c0_i32 = arith.constant 0 : i32
    %c0_i32_0 = arith.constant 0 : i32
    %c0_i32_1 = arith.constant 0 : i32
    return %arg0, %c0_i32, %c0_i32_0 : i32, i32, i32
  }
}

</mosaic_0001>

<bundles_post_ra>
// kernel: tpu_custom_call.1
= control target key start
LH: loop header
LB: loop body
LE: loop exit
PB: predicated region body
PF: predicated region fallthrough
CT: control target
= control target key end

     0   :  { %s4404_s0 = inlined_call_operand.vmem [shape: f32[2,8,32], index: 0, kind: input, shape index: {}]   ;;  %s4405_s1 = inlined_call_operand.vmem [shape: f32[2,1,32], index: 1, kind: input, shape index: {}]   ;;  %s4406_s2 = inlined_call_operand.vmem [shape: f32[2,1,32], index: 2, kind: input, shape index: {}]   ;;  %s4407_s3 = inlined_call_operand.vmem [shape: bf16[2,32,96], index: 3, kind: input, shape index: {}]   ;;  %s4408_s4 = inlined_call_operand.vmem [shape: bf16[2,32,32], index: 4, kind: input, shape index: {}]   ;;  %s4409_s5 = inlined_call_operand.vmem [shape: f32[2,1,32], index: 5, kind: input, shape index: {}]   ;;  %s4410_s6 = inlined_call_operand.vmem [shape: f32[2,1,32], index: 6, kind: input, shape index: {}]   ;;  %s4411_s7 = inlined_call_operand.vmem [shape: f32[2,1,32], index: 7, kind: input, shape index: {}]   ;;  %s4412_s8 = inlined_call_operand.vmem [shape: bf16[2,32,128], index: 8, kind: input, shape index: {}]   ;;  %s4413_s9 = inlined_call_operand.vmem [shape: f32[2,1,128], index: 9, kind: input, shape index: {}]   ;;  %s4414_s10 = inlined_call_operand.vmem [shape: bf16[2,128,32], index: 10, kind: input, shape index: {}]   ;;  %s4415_s11 = inlined_call_operand.vmem [shape: f32[2,1,32], index: 11, kind: input, shape index: {}]   ;;  %s4416_s12 = inlined_call_operand.hbm [shape: f32[2,8,32], index: 12, kind: output, shape index: {}]  }
   0x1   :  { %4419 = sst [smem:[#allocation8_spill]] %s4407_s3 }
   0x2   :  { %4420 = sst [smem:[#allocation9_spill]] %s4408_s4 }
   0x3   :  { %4421 = sst [smem:[#allocation10_spill]] %s4416_s12 }
   0x4   :  { %17 = vsyncpa [#allocation3], 0  ;;  %s3797_s21 = smov 0   ;;  %s3799_s22 = smov 0  }
   0x5   :  { %s3801_s23 = smov 0  }
   0x6 LB: > { %4422 = sst [smem:[#allocation5_spill]] %s3712_s22  ;;  %s32_s25 = sadd.s32 1, %s3712_s22  ;;  %s3716_s23 = sphi %s3801_s23, %s23_s23   ;;  %s3712_s22 = sphi %s3799_s22, %s4439_s22   ;;  %s3708_s21 = sphi %s3797_s21, %s4438_s21  }
   0x7   : > { %4423 = sst [smem:[#allocation6_spill]] %s3716_s23  ;;  %p33_p0 = scmp.ge.s32.totalorder %s32_s25, 2 }
   0x8   : > { %p3283_p1 = scmp.ge.s32.totalorder %s3716_s23, 1  ;;  %p472_p2 = scmp.lt.s32.totalorder %s3716_s23, 3 }
   0x9   : > { %s4441_s25 = smov (%p33_p0, %s32_s25), 0 }
   0xa   : > { %4424 = sst [smem:[#allocation7_spill]] %s4441_s25  ;;  %p473_p3 = pnand %p3283_p1, %p472_p2 }
   0xb   : > { %p556_p4 = scmp.lt.s32.totalorder (!%p473_p3), %s3708_s21, 1  ;;  %s4425_s3 = sld [smem:[#allocation8_spill]] (!%p473_p3) }
   0xc   : > { %476 = sbr.rel (%p473_p3) target bundleno = 2724 (0xaa4), region = 68  ;;  %s4426_s4 = sld [smem:[#allocation9_spill]] (!%p473_p3) }
   0xd   : > { %p3292_p5 = scmp.ne.s32.totalorder (!%p473_p3), %s3708_s21, 0 }
  0x11   : > { %s3816_s26 = scalar_select %p556_p4, %s3708_s21, 1 }
  0x13   : > { %s3353_s15 = sshll.u32 %s3816_s26, 4  ;;  %s580_s12 = scalar_lea.vmem %s4411_s7, %s3816_s26 }
  0x14   : > { %s3834_s27 = scalar_lea.vmem %s4425_s3, %s3353_s15  ;;  %s3839_s25 = scalar_lea.vmem %s4426_s4, %s3353_s15 }
  0x15   : > { %s3852_s18 = scalar_lea.vmem %s4412_s8, %s3353_s15  ;;  %s588_s3 = scalar_lea.vmem %s4413_s9, %s3816_s26 }
  0x16   : > { %s3356_s24 = sshll.u32 %s3816_s26, 6  ;;  %s596_s23 = scalar_lea.vmem %s4415_s11, %s3816_s26 }
  0x17   : > { %s3866_s30 = scalar_lea.vmem %s4414_s10, %s3356_s24  ;;  %602 = sbr.rel (%p3292_p5) target bundleno = 30 (0x1e), region = 72 }
  0x1c   : > { %v603_v0 = vld [vmem:[%s4404_s0] sm:$0xff]  ;;  %vm605_vm0 = vcmask 261120   ;;  %v604_v1 = vld [vmem:[%s4404_s0 + $0x8] sm:$0xff] }
  0x1d   : > { %606 = vst.msk [vmem:[#allocation2] sm:$0xff] %vm605_vm0, %v603_v0  ;;  %607 = vst.msk [vmem:[#allocation2 + $0x8] sm:$0xff] %vm605_vm0, %v604_v1 }
  0x1e PF: > { %vm612_vm1 = vcmask 261120   ;;  %v3606_v16 = vld [vmem:[%s3834_s27 + $0x8] sm:$0xff]   ;;  %v3718_v17 = vmov 0.0   ;;  %vm3719_vm2 = vmmov 0   ;;  %v3607_v18 = vld [vmem:[%s3834_s27] sm:$0xff]   ;;  %s4427_s27 = scalar_lea.vmem %s4405_s1, %s3816_s26  ;;  %s4428_s20 = scalar_lea.vmem %s4406_s2, %s3816_s26  ;;  %v742_v48 = vlaneseq }
  0x1f   : > { %3407 = vmatprep.subr.bf16.mxu0 %v3718_v17  ;;  %3411 = vmatprep.mubr.msk.bf16.mxu0 %vm3719_vm2, %v3718_v17  ;;  %v3293_v27 = vld [vmem:[%s4427_s27] ss:$0 sm:$0xff]  ;;  %s3720_s24 = smov 112   ;;  %s3721_s28 = smov 120   ;;  %v3724_v46 = vmov 1983009808  }
  0x20   : > { %3408 = vmatpush3.bf16.msra.mxu0 %v3606_v16  ;;  %3427 = vmatprep.subr.bf16.mxu1 %v3718_v17  ;;  %v3294_v31 = vld [vmem:[%s4428_s20] ss:$0 sm:$0xff]  ;;  %s3722_s22 = smov 104   ;;  %s3723_s29 = smov 96   ;;  %v740_v47 = vunpack.c.l.s4 %v3724_v46  ;;  %v3932_v50 = vshrl.u32 %v742_v48, 7  ;;  %vm1625_vm3 = vcmask 64512  }
  0x21   : > { %3409 = vmatprep.subr.bf16.mxu0 %v3718_v17  ;;  %3429 = vmatprep.mubr.msk.bf16.mxu1 %vm3719_vm2, %v3718_v17  ;;  %v3725_v51 = vmov 1934713408   ;;  %s3726_s14 = smov 64   ;;  %vm2116_vm5 = vcmask 1043456   ;;  %s3727_s13 = smov 16   ;;  %vm2780_vm6 = vcmask 130048  }
  0x22   : > { %v741_v49 = vunpack.c.0.s8 %v740_v47  ;;  %v772_v52 = vunpack.c.l.s4 %v3725_v51  ;;  %s3729_s15 = smov 24   ;;  %vm2783_vm7 = vcmask 195584   ;;  %s4431_s21 = scalar_lea.vmem %s4409_s5, %s3816_s26 }
  0x24   : > { %v608_v2 = vld [vmem:[#allocation2] sm:$0xff]  ;;  %v609_v3 = vld [vmem:[#allocation2 + $0x8] sm:$0xff]  ;;  %3410 = vmatpush3.bf16.msra.mxu0 %v3607_v18  ;;  %v3939_v55 = vsub.s32 %v741_v49, %v3932_v50  ;;  %v773_v58 = vunpack.c.0.s8 %v772_v52 }
  0x25   : > { %v613_v4 = vsel %vm612_vm1, %v608_v2, 0.0  ;;  %v616_v5 = vsel %vm612_vm1, %v609_v3, 0.0  ;;  %3415 = vmatprep.subr.bf16.mxu0 %v3718_v17 }
  0x26   : > { %614 = vadd.xlane.f32.xlu0 %v613_v4  ;;  %v3950_v63 = vsub.s32 %v773_v58, %v3932_v50 }
  0x2a   : > { %617 = vadd.xlane.f32.xlu0 %v616_v5 }
  0xaf   : > { %v615_v6 = vpop.xlane.xlu0 %614 }
  0xb0   : > { %v620_v7 = vmul.f32 0.03125, %v615_v6 }
  0xb2   : > { %v622_v8 = vsub.f32 %v608_v2, %v620_v7 }
  0xb3   : > { %v618_v9 = vpop.xlane.xlu0 %617 }
  0xb4   : > { %v621_v10 = vmul.f32 0.03125, %v618_v9  ;;  %v624_v11 = vmul.f32 %v622_v8, %v622_v8 }
  0xb6   : > { %v623_v12 = vsub.f32 %v609_v3, %v621_v10  ;;  %v626_v13 = vsel %vm612_vm1, %v624_v11, 0.0 }
  0xb7   : > { %627 = vadd.xlane.f32.xlu1 %v626_v13 }
  0xb8   : > { %v625_v14 = vmul.f32 %v623_v12, %v623_v12 }
  0xba   : > { %v629_v15 = vsel %vm612_vm1, %v625_v14, 0.0 }
  0xbb   : > { %630 = vadd.xlane.f32.xlu1 %v629_v15 }
 0x140   : > { %v628_v19 = vpop.xlane.xlu1 %627 }
 0x141   : > { %v632_v20 = vmul.f32 0.03125, %v628_v19 }
 0x143   : > { %v634_v21 = vadd.f32 1e-05, %v632_v20 }
 0x144   : > { %v631_v22 = vpop.xlane.xlu1 %630 }
 0x145   : > { %3620 = vrsqrt.f32 %v634_v21  ;;  %v633_v23 = vmul.f32 0.03125, %v631_v22 }
 0x147   : > { %v635_v24 = vadd.f32 1e-05, %v633_v23 }
 0x149   : > { %3622 = vrsqrt.f32 %v635_v24 }
 0x152   : > { %v3621_v25 = vpop.eup %3620 }
 0x153   : > { %v638_v26 = vmul.f32 %v3621_v25, %v622_v8 }
 0x155   : > { %v646_v30 = vmul.f32 %v3293_v27, %v638_v26 }
 0x156   : > { %v3623_v28 = vpop.eup %3622 }
 0x157   : > { %v639_v29 = vmul.f32 %v3623_v28, %v623_v12  ;;  %v654_v33 = vadd.f32 %v3294_v31, %v646_v30 }
 0x159   : > { %v647_v32 = vmul.f32 %v3293_v27, %v639_v29 }
 0x15b   : > { %v655_v34 = vadd.f32 %v3294_v31, %v647_v32 }
 0x15d   : > { %v656_v35 = vpack.c.bf16 %v655_v34, %v654_v33 }
 0x15f   : > { %3412 = vmatmul.mubr.msk.bf16.vlgmr.msra.gmra.mxu0 %vm612_vm1, %v656_v35 }
 0x160   : > { %3417 = vmatprep.mubr.msk.bf16.mxu0 %vm3719_vm2, %v3718_v17 }
 0x21f   : > { %v3901_v36 = vpop.f32.mrf.mxu0 }
 0x220   : > { %725 = vrot.lane.b32.xlu1 %v3901_v36, %s3720_s24  ;;  %719 = vrot.lane.b32.xlu0 %v3901_v36, %s3721_s28 }
 0x221   : > { %v3413_v37 = vpop.f32.mrf.mxu0 }
 0x223   : > { %v3905_v38 = vpop.f32.mrf.mxu0 }
 0x224   : > { %731 = vrot.lane.b32.xlu1 %v3901_v36, %s3722_s22  ;;  %727 = vrot.lane.b32.xlu0 %v3905_v38, %s3720_s24 }
 0x225   : > { %v3414_v39 = vpop.f32.mrf.mxu0 }
 0x228   : > { %1017 = vrot.lane.b32.xlu0 %v3901_v36, %s3723_s29  ;;  %721 = vrot.lane.b32.xlu1 %v3905_v38, %s3721_s28 }
 0x22c   : > { %733 = vrot.lane.b32.xlu1 %v3905_v38, %s3722_s22  ;;  %s3730_s22 = smov [#allocation2]  }
 0x292   : > { %v3912_v40 = vpop.permute.xlu1 %725  ;;  %v3914_v41 = vpop.permute.xlu0 %719 }
 0x293   : > { %1025 = vrot.lane.b32.xlu0 %v3912_v40, %s3723_s29  ;;  %1021 = vrot.lane.b32.xlu1 %v3914_v41, %s3723_s29  ;;  %v737_v56 = vcombine.low %v3901_v36, %v3912_v40  ;;  %v738_v57 = vcombine.high %v3901_v36, %v3912_v40 }
 0x295   : > { %v745_v61 = vrot.slane %v737_v56, %v3939_v55  ;;  %v752_v62 = vrot.slane %v738_v57, %v3939_v55 }
 0x296   : > { %v3918_v42 = vpop.permute.xlu1 %731  ;;  %v3922_v43 = vpop.permute.xlu0 %727 }
 0x297   : > { %1019 = vrot.lane.b32.xlu0 %v3905_v38, %s3723_s29  ;;  %1029 = vrot.lane.b32.xlu1 %v3918_v42, %s3723_s29  ;;  %v753_v53 = vcombine.low %v3914_v41, %v3918_v42  ;;  %v754_v54 = vcombine.high %v3914_v41, %v3918_v42  ;;  %v805_v14 = vcombine.low %v3905_v38, %v3922_v43 }
 0x298   : > { %v806_v18 = vcombine.high %v3905_v38, %v3922_v43 }
 0x299   : > { %v761_v59 = vrot.slane %v753_v53, %v3939_v55  ;;  %v768_v60 = vrot.slane %v754_v54, %v3939_v55  ;;  %v813_v25 = vrot.slane %v805_v14, %v3939_v55 }
 0x29a   : > { %v3924_v44 = vpop.permute.xlu1 %721  ;;  %v1018_v9 = vpop.permute.xlu0 %1017  ;;  %v820_v27 = vrot.slane %v806_v18, %v3939_v55 }
 0x29b   : > { %1027 = vrot.lane.b32.xlu0 %v3922_v43, %s3723_s29  ;;  %1023 = vrot.lane.b32.xlu1 %v3924_v44, %s3723_s29  ;;  %v769_v0 = vcombine.low %v745_v61, %v761_v59  ;;  %v770_v1 = vcombine.high %v745_v61, %v761_v59  ;;  %v785_v2 = vcombine.low %v752_v62, %v768_v60 }
 0x29c   : > { %v786_v3 = vcombine.high %v752_v62, %v768_v60 }
 0x29d   : > { %v777_v4 = vrot.slane %v769_v0, %v3950_v63  ;;  %v784_v5 = vrot.slane %v770_v1, %v3950_v63  ;;  %v793_v6 = vrot.slane %v785_v2, %v3950_v63 }
 0x29e   : > { %v3928_v45 = vpop.permute.xlu1 %733  ;;  %v800_v7 = vrot.slane %v786_v3, %v3950_v63 }
 0x29f   : > { %1031 = vrot.lane.b32.xlu1 %v3928_v45, %s3723_s29  ;;  %v873_v8 = vcombine.low %v777_v4, %v784_v5  ;;  %v3298_v10 = vcombine.high %v777_v4, %v784_v5  ;;  %v821_v13 = vcombine.low %v3924_v44, %v3928_v45  ;;  %v822_v15 = vcombine.high %v3924_v44, %v3928_v45  ;;  %s3112_s29 = sshll.u32 %s3730_s22, 4  ;;  %s3113_s29 = int_to_ptr.vmem [resolvable:$true] %s3112_s29 }
 0x2a0   : > { %v889_v11 = vcombine.low %v793_v6, %v800_v7  ;;  %v3299_v12 = vcombine.high %v793_v6, %v800_v7  ;;  %p3673_p10 = scmp.lt.s32.totalorder %s3113_s29, %s3113_s29 }
 0x2a1   : > { %v880_v16 = vrot.slane %v873_v8, %v3939_v55  ;;  %v888_v21 = vrot.slane %v3298_v10, %v3939_v55  ;;  %v829_v24 = vrot.slane %v821_v13, %v3939_v55  ;;  %v836_v26 = vrot.slane %v822_v15, %v3939_v55 }
 0x2a2   : > { %v896_v22 = vrot.slane %v889_v11, %v3939_v55  ;;  %v904_v23 = vrot.slane %v3299_v12, %v3939_v55 }
 0x2a3   : > { %v837_v31 = vcombine.low %v813_v25, %v829_v24  ;;  %v838_v32 = vcombine.high %v813_v25, %v829_v24  ;;  %v905_v34 = vcombine.low %v880_v16, %v888_v21  ;;  %v853_v46 = vcombine.low %v820_v27, %v836_v26 }
 0x2a4   : > { %v921_v35 = vcombine.low %v896_v22, %v904_v23  ;;  %v854_v47 = vcombine.high %v820_v27, %v836_v26  ;;  %v906_v49 = vcombine.high %v880_v16, %v888_v21  ;;  %v922_v51 = vcombine.high %v896_v22, %v904_v23 }
 0x2a5   : > { %v845_v57 = vrot.slane %v837_v31, %v3950_v63  ;;  %v852_v58 = vrot.slane %v838_v32, %v3950_v63  ;;  %v3979_v60 = vrot.slane %v905_v34, %v3950_v63  ;;  %v861_v4 = vrot.slane %v853_v46, %v3950_v63 }
 0x2a6   : > { %v3982_v61 = vrot.slane %v921_v35, %v3950_v63  ;;  %v868_v5 = vrot.slane %v854_v47, %v3950_v63  ;;  %v3987_v6 = vrot.slane %v906_v49, %v3950_v63  ;;  %v3990_v7 = vrot.slane %v922_v51, %v3950_v63 }
 0x2a7   : > { %v941_v12 = vcombine.low %v845_v57, %v852_v58  ;;  %v3300_v13 = vcombine.high %v845_v57, %v852_v58 }
 0x2a8   : > { %v957_v22 = vcombine.low %v861_v4, %v868_v5  ;;  %v3301_v23 = vcombine.high %v861_v4, %v868_v5 }
 0x305   : > { %v1026_v19 = vpop.permute.xlu0 %1025  ;;  %v1022_v20 = vpop.permute.xlu1 %1021 }
 0x306   : > { %v1041_v28 = vcombine.low %v1018_v9, %v1026_v19  ;;  %v1042_v29 = vcombine.high %v1018_v9, %v1026_v19 }
 0x308   : > { %v1049_v52 = vrot.slane %v1041_v28, %v3939_v55  ;;  %v1056_v53 = vrot.slane %v1042_v29, %v3939_v55 }
 0x309   : > { %v1020_v30 = vpop.permute.xlu0 %1019  ;;  %v1030_v33 = vpop.permute.xlu1 %1029 }
 0x30a   : > { %v1057_v37 = vcombine.low %v1022_v20, %v1030_v33  ;;  %v1058_v39 = vcombine.high %v1022_v20, %v1030_v33 }
 0x30c   : > { %v1065_v54 = vrot.slane %v1057_v37, %v3939_v55  ;;  %v1072_v56 = vrot.slane %v1058_v39, %v3939_v55 }
 0x30d   : > { %v1024_v59 = vpop.permute.xlu1 %1023  ;;  %v1028_v3 = vpop.permute.xlu0 %1027 }
 0x30e   : > { %v1073_v62 = vcombine.low %v1049_v52, %v1065_v54  ;;  %v1074_v0 = vcombine.high %v1049_v52, %v1065_v54  ;;  %v1089_v1 = vcombine.low %v1056_v53, %v1072_v56  ;;  %v1090_v2 = vcombine.high %v1056_v53, %v1072_v56 }
 0x30f   : > { %v1109_v14 = vcombine.low %v1020_v30, %v1028_v3  ;;  %v1110_v15 = vcombine.high %v1020_v30, %v1028_v3 }
 0x310   : > { %v1081_v8 = vrot.slane %v1073_v62, %v3950_v63  ;;  %v1088_v9 = vrot.slane %v1074_v0, %v3950_v63  ;;  %v1097_v10 = vrot.slane %v1089_v1, %v3950_v63  ;;  %v1104_v11 = vrot.slane %v1090_v2, %v3950_v63 }
 0x311   : > { %v1032_v16 = vpop.permute.xlu1 %1031  ;;  %v1117_v30 = vrot.slane %v1109_v14, %v3939_v55  ;;  %v1124_v31 = vrot.slane %v1110_v15, %v3939_v55  ;;  %v4013_v0 = vrot.slane %v941_v12, %v3939_v55  ;;  %v956_v1 = vrot.slane %v3300_v13, %v3939_v55 }
 0x312   : > { %v1177_v18 = vcombine.low %v1081_v8, %v1088_v9  ;;  %v3302_v19 = vcombine.high %v1081_v8, %v1088_v9  ;;  %v1193_v20 = vcombine.low %v1097_v10, %v1104_v11  ;;  %v3303_v21 = vcombine.high %v1097_v10, %v1104_v11 }
 0x313   : > { %v1125_v24 = vcombine.low %v1024_v59, %v1032_v16  ;;  %v1126_v25 = vcombine.high %v1024_v59, %v1032_v16  ;;  %v964_v10 = vrot.slane %v957_v22, %v3939_v55  ;;  %v972_v11 = vrot.slane %v3301_v23, %v3939_v55 }
 0x314   : > { %v1184_v26 = vrot.slane %v1177_v18, %v3939_v55  ;;  %v1192_v27 = vrot.slane %v3302_v19, %v3939_v55  ;;  %v1200_v28 = vrot.slane %v1193_v20, %v3939_v55  ;;  %v1208_v29 = vrot.slane %v3303_v21, %v3939_v55 }
 0x315   : > { %v1133_v32 = vrot.slane %v1125_v24, %v3939_v55  ;;  %v1140_v33 = vrot.slane %v1126_v25, %v3939_v55  ;;  %v937_v25 = vcombine.low %v3979_v60, %v3982_v61 }
 0x316   : > { %v1209_v34 = vcombine.low %v1184_v26, %v1192_v27  ;;  %v1225_v35 = vcombine.low %v1200_v28, %v1208_v29  ;;  %v1210_v37 = vcombine.high %v1184_v26, %v1192_v27  ;;  %v1226_v39 = vcombine.high %v1200_v28, %v1208_v29 }
 0x317   : > { %v1141_v46 = vcombine.low %v1117_v30, %v1133_v32  ;;  %v1142_v47 = vcombine.high %v1117_v30, %v1133_v32  ;;  %v1157_v49 = vcombine.low %v1124_v31, %v1140_v33  ;;  %v1158_v51 = vcombine.high %v1124_v31, %v1140_v33 }
 0x318   : > { %v1217_v52 = vrot.slane %v1209_v34, %v3950_v63  ;;  %v1233_v53 = vrot.slane %v1225_v35, %v3950_v63  ;;  %v1224_v54 = vrot.slane %v1210_v37, %v3950_v63  ;;  %v1240_v56 = vrot.slane %v1226_v39, %v3950_v63 }
 0x319   : > { %v1149_v57 = vrot.slane %v1141_v46, %v3950_v63  ;;  %v1156_v58 = vrot.slane %v1142_v47, %v3950_v63  ;;  %v1165_v59 = vrot.slane %v1157_v49, %v3950_v63  ;;  %v1172_v62 = vrot.slane %v1158_v51, %v3950_v63 }
 0x31a   : > { %v1241_v2 = vcombine.low %v1217_v52, %v1233_v53  ;;  %v1243_v3 = vcombine.low %v1224_v54, %v1240_v56  ;;  %v1242_v21 = vcombine.high %v1217_v52, %v1233_v53  ;;  %v939_v26 = vcombine.low %v3987_v6, %v3990_v7 }
 0x31b   : > { %v1245_v4 = vcombine.low %v1149_v57, %v1156_v58  ;;  %v3304_v5 = vcombine.high %v1149_v57, %v1156_v58  ;;  %v1261_v8 = vcombine.low %v1165_v59, %v1172_v62  ;;  %v3305_v9 = vcombine.high %v1165_v59, %v1172_v62 }
 0x31c   : > { %v1313_v14 = vpack.c.bf16 %v1241_v2, %v1241_v2  ;;  %v1315_v15 = vpack.c.bf16 %v1243_v3, %v1243_v3  ;;  %v973_v30 = vcombine.low %v4013_v0, %v956_v1  ;;  %v989_v31 = vcombine.low %v964_v10, %v972_v11 }
 0x31d   : > { %v1252_v16 = vrot.slane %v1245_v4, %v3939_v55  ;;  %v1260_v18 = vrot.slane %v3304_v5, %v3939_v55  ;;  %v1268_v12 = vrot.slane %v1261_v8, %v3939_v55  ;;  %v1276_v13 = vrot.slane %v3305_v9, %v3939_v55 }
 0x31e   : > { %v1630_v19 = vsel %vm1625_vm3, %v1313_v14, 0  ;;  %v1722_v20 = vsel %vm1625_vm3, %v1315_v15, 0  ;;  %v1314_v32 = vpack.c.bf16 %v1242_v21, %v1242_v21  ;;  %v1009_v37 = vpack.c.bf16 %v937_v25, %v937_v25 }
 0x31f   : > { %3416 = vmatpush3.bf16.xpose.msra.mxu0 %v1630_v19  ;;  %3428 = vmatpush3.bf16.xpose.msra.mxu1 %v1722_v20  ;;  %v1277_v22 = vcombine.low %v1252_v16, %v1260_v18  ;;  %v1293_v24 = vcombine.low %v1268_v12, %v1276_v13  ;;  %v1278_v23 = vcombine.high %v1252_v16, %v1260_v18  ;;  %v2005_v20 = vand.u32 127, %v742_v48 }
 0x320   : > { %3421 = vmatprep.subr.bf16.mxu0 %v3718_v17  ;;  %3439 = vmatprep.subr.bf16.mxu1 %v3718_v17  ;;  %v1294_v27 = vcombine.high %v1268_v12, %v1276_v13  ;;  %v1011_v39 = vpack.c.bf16 %v939_v26, %v939_v26  ;;  %v981_v47 = vrot.slane %v973_v30, %v3950_v63  ;;  %v1676_v51 = vsel %vm1625_vm3, %v1314_v32, 0 }
 0x321   : > { %v1285_v28 = vrot.slane %v1277_v22, %v3950_v63  ;;  %v1301_v29 = vrot.slane %v1293_v24, %v3950_v63  ;;  %v1292_v34 = vrot.slane %v1278_v23, %v3950_v63  ;;  %v997_v49 = vrot.slane %v989_v31, %v3950_v63 }
 0x322   : > { %v1308_v35 = vrot.slane %v1294_v27, %v3950_v63  ;;  %v1244_v52 = vcombine.high %v1224_v54, %v1240_v56  ;;  %v938_v58 = vcombine.high %v3979_v60, %v3982_v61  ;;  %v974_v54 = vcombine.high %v4013_v0, %v956_v1 }
 0x323   : > { %v1309_v33 = vcombine.low %v1285_v28, %v1301_v29  ;;  %v1005_v59 = vcombine.low %v981_v47, %v997_v49  ;;  %v990_v56 = vcombine.high %v964_v10, %v972_v11  ;;  %v1310_v61 = vcombine.high %v1285_v28, %v1301_v29 }
 0x324   : > { %v1311_v57 = vcombine.low %v1292_v34, %v1308_v35  ;;  %v1316_v62 = vpack.c.bf16 %v1244_v52, %v1244_v52  ;;  %v1010_v3 = vpack.c.bf16 %v938_v58, %v938_v58  ;;  %v988_v5 = vrot.slane %v974_v54, %v3950_v63 }
 0x325   : > { %v1317_v46 = vpack.c.bf16 %v1309_v33, %v1309_v33  ;;  %v1013_v4 = vpack.c.bf16 %v1005_v59, %v1005_v59  ;;  %v1004_v8 = vrot.slane %v990_v56, %v3950_v63  ;;  %v940_v0 = vcombine.high %v3987_v6, %v3990_v7 }
 0x326   : > { %3418 = vmatmul.mubr.msk.bf16.vlgmr.msra.gmra.mxu0 %vm1625_vm3, %v1009_v37  ;;  %3430 = vmatmul.mubr.msk.bf16.vlgmr.msra.gmra.mxu1 %vm1625_vm3, %v1011_v39  ;;  %v1319_v2 = vpack.c.bf16 %v1311_v57, %v1311_v57  ;;  %v1768_v60 = vsel %vm1625_vm3, %v1316_v62, 0  ;;  %v1318_v10 = vpack.c.bf16 %v1310_v61, %v1310_v61  ;;  %v1312_v6 = vcombine.high %v1292_v34, %v1308_v35 }
 0x327   : > { %3422 = vmatpush3.bf16.xpose.msra.mxu0 %v1676_v51  ;;  %v1814_v53 = vsel %vm1625_vm3, %v1317_v46, 0  ;;  %3423 = vmatprep.mubr.msk.bf16.mxu0 %vm3719_vm2, %v3718_v17  ;;  %v1007_v1 = vcombine.low %v988_v5, %v1004_v8  ;;  %v1012_v11 = vpack.c.bf16 %v940_v0, %v940_v0  ;;  %v1006_v7 = vcombine.high %v981_v47, %v997_v49 }
 0x328   : > { %3440 = vmatpush3.bf16.xpose.msra.mxu1 %v1814_v53  ;;  %3441 = vmatprep.mubr.msk.bf16.mxu1 %vm3719_vm2, %v3718_v17  ;;  %v1906_v9 = vsel %vm1625_vm3, %v1319_v2, 0  ;;  %v1860_v15 = vsel %vm1625_vm3, %v1318_v10, 0  ;;  %v1320_v16 = vpack.c.bf16 %v1312_v6, %v1312_v6  ;;  %v1008_v13 = vcombine.high %v988_v5, %v1004_v8 }
 0x329   : > { %3433 = vmatprep.subr.bf16.mxu0 %v3718_v17  ;;  %3451 = vmatprep.subr.bf16.mxu1 %v3718_v17  ;;  %v1015_v14 = vpack.c.bf16 %v1007_v1, %v1007_v1  ;;  %v1014_v18 = vpack.c.bf16 %v1006_v7, %v1006_v7  ;;  %vm4082_vm4 = vcmp.le.s32.totalorder %v2005_v20, %v3932_v50 }
 0x32a   : > { %v1952_v12 = vsel %vm1625_vm3, %v1320_v16, 0  ;;  %v1016_v19 = vpack.c.bf16 %v1008_v13, %v1008_v13 }
 0x32e   : > { %3424 = vmatmul.mubr.msk.bf16.vlgmr.msra.gmra.mxu0 %vm1625_vm3, %v1010_v3 }
 0x32f   : > { %3442 = vmatmul.mubr.msk.bf16.vlgmr.msra.gmra.mxu1 %vm1625_vm3, %v1013_v4  ;;  %3434 = vmatpush3.bf16.xpose.msra.mxu0 %v1768_v60 }
 0x330   : > { %3452 = vmatpush3.bf16.xpose.msra.mxu1 %v1906_v9  ;;  %3435 = vmatprep.mubr.msk.bf16.mxu0 %vm3719_vm2, %v3718_v17 }
 0x331   : > { %3453 = vmatprep.mubr.msk.bf16.mxu1 %vm3719_vm2, %v3718_v17  ;;  %3445 = vmatprep.subr.bf16.mxu0 %v3718_v17 }
 0x332   : > { %3463 = vmatprep.subr.bf16.mxu1 %v3718_v17 }
 0x336   : > { %3436 = vmatmul.mubr.msk.bf16.vlgmr.msra.gmra.mxu0 %vm1625_vm3, %v1012_v11 }
 0x337   : > { %3454 = vmatmul.mubr.msk.bf16.vlgmr.msra.gmra.mxu1 %vm1625_vm3, %v1015_v14  ;;  %3446 = vmatpush3.bf16.xpose.msra.mxu0 %v1860_v15 }
 0x338   : > { %3447 = vmatprep.mubr.msk.bf16.mxu0 %vm3719_vm2, %v3718_v17  ;;  %3457 = vmatprep.subr.bf16.mxu0 %v3718_v17 }
 0x339   : > { %3465 = vmatprep.mubr.msk.bf16.mxu1 %vm3719_vm2, %v3718_v17 }
 0x33e   : > { %3448 = vmatmul.mubr.msk.bf16.vlgmr.msra.gmra.mxu0 %vm1625_vm3, %v1014_v18 }
 0x33f   : > { %3458 = vmatpush3.bf16.xpose.msra.mxu0 %v1952_v12  ;;  %3459 = vmatprep.mubr.msk.bf16.mxu0 %vm3719_vm2, %v3718_v17 }
 0x340   : > { %3469 = vmatprep.subr.bf16.mxu0 %v3718_v17 }
 0x346   : > { %3460 = vmatmul.mubr.msk.bf16.vlgmr.msra.gmra.mxu0 %vm1625_vm3, %v1016_v19 }
 0x347   : > { %3471 = vmatprep.mubr.msk.bf16.mxu0 %vm3719_vm2, %v3718_v17 }
 0x3e6   : > { %v1666_v21 = vpop.f32.mrf.mxu0  ;;  %v1758_v22 = vpop.f32.mrf.mxu1 }
 0x3e7   : > { %v1994_v23 = vmul.f32 0.35355338, %v1666_v21  ;;  %v1996_v25 = vmul.f32 0.35355338, %v1758_v22 }
 0x3e8   : > { %v3419_v26 = vpop.f32.mrf.mxu0  ;;  %v3431_v27 = vpop.f32.mrf.mxu1 }
 0x3e9   : > { %v4088_v28 = vsel %vm4082_vm4, %v1994_v23, -inf  ;;  %v4094_v50 = vsel %vm4082_vm4, %v1996_v25, -inf }
 0x3ea   : > { %v1669_v29 = vpop.f32.mrf.mxu0  ;;  %v1761_v30 = vpop.f32.mrf.mxu1  ;;  %v2017_v48 = vsel %vm1625_vm3, %v4088_v28, -inf  ;;  %v2023_v34 = vsel %vm1625_vm3, %v4094_v50, -inf }
 0x3eb   : > { %2018 = vmax.xlane.f32.xlu0 %v2017_v48 }
 0x3ec   : > { %v3420_v31 = vpop.f32.mrf.mxu0  ;;  %v3432_v32 = vpop.f32.mrf.mxu1 }
 0x3ee   : > { %v1712_v33 = vpop.f32.mrf.mxu0 }
 0x3ef   : > { %v1995_v35 = vmul.f32 0.35355338, %v1712_v33  ;;  %v1850_v37 = vpop.f32.mrf.mxu1  ;;  %2024 = vmax.xlane.f32.xlu0 %v2023_v34 }
 0x3f0   : > { %v1998_v39 = vmul.f32 0.35355338, %v1850_v37  ;;  %v3425_v46 = vpop.f32.mrf.mxu0 }
 0x3f1   : > { %v3443_v47 = vpop.f32.mrf.mxu1  ;;  %v2010_v49 = vsel %vm4082_vm4, %v1995_v35, -inf }
 0x3f2   : > { %v1715_v51 = vpop.f32.mrf.mxu0  ;;  %v2013_v52 = vsel %vm4082_vm4, %v1998_v39, -inf  ;;  %v2020_v53 = vsel %vm1625_vm3, %v2010_v49, -inf }
 0x3f3   : > { %v1853_v57 = vpop.f32.mrf.mxu1  ;;  %v2029_v58 = vsel %vm1625_vm3, %v2013_v52, -inf  ;;  %2021 = vmax.xlane.f32.xlu1 %v2020_v53 }
 0x3f4   : > { %2030 = vmax.xlane.f32.xlu0 %v2029_v58  ;;  %v3426_v59 = vpop.f32.mrf.mxu0 }
 0x3f5   : > { %v3444_v54 = vpop.f32.mrf.mxu1 }
 0x3f6   : > { %v1804_v56 = vpop.f32.mrf.mxu0 }
 0x3f7   : > { %v1997_v62 = vmul.f32 0.35355338, %v1804_v56  ;;  %v1942_v2 = vpop.f32.mrf.mxu1 }
 0x3f8   : > { %v2000_v3 = vmul.f32 0.35355338, %v1942_v2  ;;  %v3437_v4 = vpop.f32.mrf.mxu0 }
 0x3f9   : > { %v3455_v5 = vpop.f32.mrf.mxu1  ;;  %v2012_v8 = vsel %vm4082_vm4, %v1997_v62, -inf }
 0x3fa   : > { %v1807_v60 = vpop.f32.mrf.mxu0  ;;  %v2026_v61 = vsel %vm1625_vm3, %v2012_v8, -inf  ;;  %v4109_v0 = vsel %vm4082_vm4, %v2000_v3, -inf }
 0x3fb   : > { %v1945_v9 = vpop.f32.mrf.mxu1  ;;  %2027 = vmax.xlane.f32.xlu0 %v2026_v61  ;;  %v2035_v14 = vsel %vm1625_vm3, %v4109_v0, -inf }
 0x3fc   : > { %v3438_v1 = vpop.f32.mrf.mxu0 }
 0x3fd   : > { %v3456_v10 = vpop.f32.mrf.mxu1 }
 0x3fe   : > { %v1896_v11 = vpop.f32.mrf.mxu0 }
 0x3ff   : > { %2036 = vmax.xlane.f32.xlu0 %v2035_v14  ;;  %v1999_v19 = vmul.f32 0.35355338, %v1896_v11 }
 0x400   : > { %v3449_v15 = vpop.f32.mrf.mxu0 }
 0x401   : > { %v2014_v21 = vsel %vm4082_vm4, %v1999_v19, -inf }
 0x402   : > { %v1899_v6 = vpop.f32.mrf.mxu0  ;;  %v2032_v22 = vsel %vm1625_vm3, %v2014_v21, -inf }
 0x404   : > { %1325 = vrot.lane.b32.xlu1 %v3914_v41, %s3726_s14  ;;  %v3450_v7 = vpop.f32.mrf.mxu0 }
 0x406   : > { %v1988_v16 = vpop.f32.mrf.mxu0 }
 0x407   : > { %v2001_v20 = vmul.f32 0.35355338, %v1988_v16 }
 0x408   : > { %1329 = vrot.lane.b32.xlu1 %v3912_v40, %s3726_s14  ;;  %v3461_v18 = vpop.f32.mrf.mxu0 }
 0x409   : > { %v2016_v41 = vsel %vm4082_vm4, %v2001_v20, -inf }
 0x40a   : > { %v1991_v12 = vpop.f32.mrf.mxu0  ;;  %v2038_v23 = vsel %vm1625_vm3, %v2016_v41, -inf }
 0x40c   : > { %v3462_v13 = vpop.f32.mrf.mxu0 }
 0x415   : > { %1321 = vrot.lane.b32.xlu0 %v3901_v36, %s3726_s14 }
 0x42c   : > { %2033 = vmax.xlane.f32.xlu1 %v2032_v22 }
 0x430   : > { %2039 = vmax.xlane.f32.xlu1 %v2038_v23 }
 0x441   : > { %1333 = vrot.lane.b32.xlu1 %v3918_v42, %s3726_s14 }
 0x474   : > { %v2019_v40 = vpop.xlane.xlu0 %2018 }
 0x475   : > { %v2041_v36 = vsub.f32 %v4088_v28, %v2019_v40 }
 0x477   : > { %v2049_v25 = vmul.f32 1.442695, %v2041_v36 }
 0x478   : > { %v2025_v26 = vpop.xlane.xlu0 %2024 }
 0x479   : > { %3624 = vpow2.f32 %v2049_v25  ;;  %v2043_v27 = vsub.f32 %v4094_v50, %v2025_v26 }
 0x47b   : > { %v2053_v29 = vmul.f32 1.442695, %v2043_v27 }
 0x47c   : > { %v2022_v30 = vpop.xlane.xlu1 %2021 }
 0x47d   : > { %3626 = vpow2.f32 %v2053_v29  ;;  %v2031_v48 = vpop.xlane.xlu0 %2030  ;;  %v2042_v24 = vsub.f32 %v2010_v49, %v2022_v30 }
 0x47e   : > { %v2045_v31 = vsub.f32 %v2013_v52, %v2031_v48 }
 0x47f   : > { %v2051_v32 = vmul.f32 1.442695, %v2042_v24 }
 0x480   : > { %v2057_v33 = vmul.f32 1.442695, %v2045_v31  ;;  %v1326_v57 = vpop.permute.xlu1 %1325 }
 0x481   : > { %3628 = vpow2.f32 %v2051_v32 }
 0x482   : > { %3630 = vpow2.f32 %v2057_v33 }
 0x484   : > { %v2028_v34 = vpop.xlane.xlu0 %2027  ;;  %v1330_v58 = vpop.permute.xlu1 %1329 }
 0x485   : > { %v2044_v42 = vsub.f32 %v2012_v8, %v2028_v34 }
 0x486   : > { %v4129_v35 = vpop.eup %3624 }
 0x487   : > { %v2055_v28 = vmul.f32 1.442695, %v2044_v42  ;;  %v2065_v37 = vsel %vm1625_vm3, %v4129_v35, 0.0 }
 0x488   : > { %2066 = vadd.xlane.f32.xlu0 %v2065_v37  ;;  %v4155_v59 = vpop.xlane.xlu0 %2036 }
 0x489   : > { %3632 = vpow2.f32 %v2055_v28 }
 0x48a   : > { %v4133_v50 = vpop.eup %3626 }
 0x48b   : > { %v2071_v39 = vsel %vm1625_vm3, %v4133_v50, 0.0 }
 0x48c   : > { %2072 = vadd.xlane.f32.xlu0 %v2071_v39  ;;  %v1322_v2 = vpop.permute.xlu0 %1321 }
 0x48d   : > { %v1345_v5 = vcombine.low %v1322_v2, %v1330_v58  ;;  %v1346_v8 = vcombine.high %v1322_v2, %v1330_v58  ;;  %v2047_v58 = vsub.f32 %v4109_v0, %v4155_v59 }
 0x48e   : > { %v4137_v46 = vpop.eup %3628 }
 0x48f   : > { %v4139_v47 = vpop.eup %3630  ;;  %v2068_v49 = vsel %vm1625_vm3, %v4137_v46, 0.0  ;;  %v1360_v1 = vrot.slane %v1346_v8, %v3939_v55 }
 0x490   : > { %v2077_v51 = vsel %vm1625_vm3, %v4139_v47, 0.0  ;;  %2069 = vadd.xlane.f32.xlu1 %v2068_v49 }
 0x491   : > { %2078 = vadd.xlane.f32.xlu0 %v2077_v51 }
 0x496   : > { %v4145_v52 = vpop.eup %3632 }
 0x497   : > { %v2074_v53 = vsel %vm1625_vm3, %v4145_v52, 0.0 }
 0x498   : > { %2075 = vadd.xlane.f32.xlu1 %v2074_v53 }
 0x4a9   : > { %1327 = vrot.lane.b32.xlu1 %v3924_v44, %s3726_s14 }
 0x4ad   : > { %1331 = vrot.lane.b32.xlu1 %v3922_v43, %s3726_s14  ;;  %v1353_v43 = vrot.slane %v1345_v5, %v3939_v55 }
 0x4b1   : > { %1335 = vrot.lane.b32.xlu1 %v3928_v45, %s3726_s14 }
 0x4b5   : > { %v2034_v54 = vpop.xlane.xlu1 %2033 }
 0x4b6   : > { %v2046_v56 = vsub.f32 %v2014_v21, %v2034_v54  ;;  %v2061_v54 = vmul.f32 1.442695, %v2047_v58 }
 0x4b8   : > { %v2059_v62 = vmul.f32 1.442695, %v2046_v56 }
 0x4b9   : > { %v2040_v3 = vpop.xlane.xlu1 %2039 }
 0x4ba   : > { %3634 = vpow2.f32 %v2059_v62  ;;  %v2048_v4 = vsub.f32 %v2016_v41, %v2040_v3 }
 0x4bc   : > { %v2063_v9 = vmul.f32 1.442695, %v2048_v4 }
 0x4bd   : > { %v1334_v44 = vpop.permute.xlu1 %1333 }
 0x4be   : > { %v1361_v60 = vcombine.low %v1326_v57, %v1334_v44  ;;  %v1362_v61 = vcombine.high %v1326_v57, %v1334_v44  ;;  %3636 = vpow2.f32 %v2063_v9 }
 0x4bf   : > { %3638 = vpow2.f32 %v2061_v54 }
 0x4c0   : > { %v1369_v45 = vrot.slane %v1361_v60, %v3939_v55  ;;  %v1376_v10 = vrot.slane %v1362_v61, %v3939_v55 }
 0x4c2   : > { %v1377_v11 = vcombine.low %v1353_v43, %v1369_v45  ;;  %v1378_v14 = vcombine.high %v1353_v43, %v1369_v45  ;;  %v1393_v15 = vcombine.low %v1360_v1, %v1376_v10  ;;  %v1394_v6 = vcombine.high %v1360_v1, %v1376_v10 }
 0x4c4   : > { %v1385_v7 = vrot.slane %v1377_v11, %v3950_v63  ;;  %v1392_v16 = vrot.slane %v1378_v14, %v3950_v63  ;;  %v1401_v18 = vrot.slane %v1393_v15, %v3950_v63  ;;  %v1408_v12 = vrot.slane %v1394_v6, %v3950_v63 }
 0x4c6   : > { %v1481_v13 = vcombine.low %v1385_v7, %v1392_v16  ;;  %v3306_v19 = vcombine.high %v1385_v7, %v1392_v16  ;;  %v1497_v20 = vcombine.low %v1401_v18, %v1408_v12  ;;  %v3307_v21 = vcombine.high %v1401_v18, %v1408_v12 }
 0x4c7   : > { %v4165_v22 = vpop.eup %3634 }
 0x4c8   : > { %v1488_v41 = vrot.slane %v1481_v13, %v3939_v55  ;;  %v1496_v23 = vrot.slane %v3306_v19, %v3939_v55  ;;  %v1504_v40 = vrot.slane %v1497_v20, %v3939_v55  ;;  %v1512_v36 = vrot.slane %v3307_v21, %v3939_v55 }
 0x4c9   : > { %v2080_v25 = vsel %vm1625_vm3, %v4165_v22, 0.0 }
 0x4ca   : > { %2081 = vadd.xlane.f32.xlu0 %v2080_v25  ;;  %v1513_v26 = vcombine.low %v1488_v41, %v1496_v23  ;;  %v1529_v27 = vcombine.low %v1504_v40, %v1512_v36  ;;  %v1514_v29 = vcombine.high %v1488_v41, %v1496_v23  ;;  %v1530_v30 = vcombine.high %v1504_v40, %v1512_v36 }
 0x4cb   : > { %v4177_v37 = vpop.eup %3636 }
 0x4cc   : > { %v1521_v48 = vrot.slane %v1513_v26, %v3950_v63  ;;  %v1537_v24 = vrot.slane %v1529_v27, %v3950_v63  ;;  %v1528_v31 = vrot.slane %v1514_v29, %v3950_v63  ;;  %v1544_v32 = vrot.slane %v1530_v30, %v3950_v63  ;;  %v4189_v56 = vpop.eup %3638 }
 0x4cd   : > { %v2086_v57 = vsel %vm1625_vm3, %v4177_v37, 0.0  ;;  %v2083_v62 = vsel %vm1625_vm3, %v4189_v56, 0.0 }
 0x4ce   : > { %v1545_v33 = vcombine.low %v1521_v48, %v1537_v24  ;;  %v1546_v34 = vcombine.high %v1521_v48, %v1537_v24  ;;  %v1547_v42 = vcombine.low %v1528_v31, %v1544_v32  ;;  %v1548_v28 = vcombine.high %v1528_v31, %v1544_v32 }
 0x4d0   : > { %v1617_v39 = vpack.c.bf16 %v1545_v33, %v1545_v33  ;;  %v1618_v49 = vpack.c.bf16 %v1546_v34, %v1546_v34  ;;  %v1619_v8 = vpack.c.bf16 %v1547_v42, %v1547_v42  ;;  %v1620_v43 = vpack.c.bf16 %v1548_v28, %v1548_v28 }
 0x4d2   : > { %v2118_v51 = vsel %vm2116_vm5, %v1617_v39, 0  ;;  %v2164_v53 = vsel %vm2116_vm5, %v1618_v49, 0  ;;  %v2210_v60 = vsel %vm2116_vm5, %v1619_v8, 0  ;;  %v2256_v10 = vsel %vm2116_vm5, %v1620_v43, 0 }
 0x4d3   : > { %3464 = vmatpush3.bf16.msra.mxu1 %v2118_v51  ;;  %3470 = vmatpush3.bf16.msra.mxu0 %v2164_v53 }
 0x4d4   : > { %3475 = vmatprep.subr.bf16.mxu1 %v3718_v17  ;;  %3481 = vmatprep.subr.bf16.mxu0 %v3718_v17 }
 0x4d5   : > { %2087 = vadd.xlane.f32.xlu1 %v2086_v57 }
 0x4e0   : > { %1323 = vrot.lane.b32.xlu0 %v3905_v38, %s3726_s14 }
 0x4ff   : > { %2084 = vadd.xlane.f32.xlu0 %v2083_v62 }
 0x511   : > { %v2067_v2 = vpop.xlane.xlu0 %2066 }
 0x512   : > { %3640 = vrcp.f32 %v2067_v2 }
 0x515   : > { %v2073_v3 = vpop.xlane.xlu0 %2072 }
 0x516   : > { %3642 = vrcp.f32 %v2073_v3 }
 0x519   : > { %v2070_v4 = vpop.xlane.xlu1 %2069 }
 0x51a   : > { %3644 = vrcp.f32 %v2070_v4  ;;  %v2079_v6 = vpop.xlane.xlu0 %2078 }
 0x51f   : > { %v3641_v5 = vpop.eup %3640 }
 0x520   : > { %v2097_v38 = vmul.f32 %v3641_v5, %v4129_v35 }
 0x521   : > { %v2076_v44 = vpop.xlane.xlu1 %2075 }
 0x522   : > { %3646 = vrcp.f32 %v2076_v44  ;;  %v2105_v0 = vpack.c.bf16 %v2097_v38, %v2097_v38 }
 0x523   : > { %v3643_v59 = vpop.eup %3642  ;;  %3648 = vrcp.f32 %v2079_v6 }
 0x524   : > { %3466 = vmatmul.mubr.msk.bf16.vlgmr.msra.gmra.mxu1 %vm1625_vm3, %v2105_v0  ;;  %v2099_v61 = vmul.f32 %v3643_v59, %v4133_v50 }
 0x525   : > { %3476 = vmatpush3.bf16.msra.mxu1 %v2210_v60  ;;  %3477 = vmatprep.mubr.msk.bf16.mxu1 %vm3719_vm2, %v3718_v17  ;;  %v1328_v14 = vpop.permute.xlu1 %1327 }
 0x526   : > { %3487 = vmatprep.subr.bf16.mxu1 %v3718_v17  ;;  %v2107_v45 = vpack.c.bf16 %v2099_v61, %v2099_v61 }
 0x527   : > { %v3645_v9 = vpop.eup %3644 }
 0x528   : > { %v2098_v35 = vmul.f32 %v3645_v9, %v4137_v46 }
 0x529   : > { %v1332_v15 = vpop.permute.xlu1 %1331 }
 0x52a   : > { %v2106_v1 = vpack.c.bf16 %v2098_v35, %v2098_v35 }
 0x52c   : > { %3472 = vmatmul.mubr.msk.bf16.vlgmr.msra.gmra.mxu0 %vm1625_vm3, %v2106_v1  ;;  %3478 = vmatmul.mubr.msk.bf16.vlgmr.msra.gmra.mxu1 %vm1625_vm3, %v2107_v45 }
 0x52d   : > { %3482 = vmatpush3.bf16.msra.mxu0 %v2256_v10  ;;  %3483 = vmatprep.mubr.msk.bf16.mxu0 %vm3719_vm2, %v3718_v17  ;;  %v1336_v7 = vpop.permute.xlu1 %1335 }
 0x52e   : > { %3493 = vmatprep.subr.bf16.mxu0 %v3718_v17  ;;  %3489 = vmatprep.mubr.msk.bf16.mxu1 %vm3719_vm2, %v3718_v17  ;;  %v1429_v18 = vcombine.low %v1328_v14, %v1336_v7  ;;  %v1430_v12 = vcombine.high %v1328_v14, %v1336_v7 }
 0x52f   : > { %v3647_v50 = vpop.eup %3646 }
 0x530   : > { %v2100_v46 = vmul.f32 %v3647_v50, %v4145_v52  ;;  %v1437_v21 = vrot.slane %v1429_v18, %v3939_v55  ;;  %v1444_v52 = vrot.slane %v1430_v12, %v3939_v55  ;;  %v3649_v54 = vpop.eup %3648 }
 0x531   : > { %v2101_v61 = vmul.f32 %v3649_v54, %v4139_v47 }
 0x532   : > { %v2108_v11 = vpack.c.bf16 %v2100_v46, %v2100_v46 }
 0x533   : > { %v2109_v50 = vpack.c.bf16 %v2101_v61, %v2101_v61 }
 0x534   : > { %3484 = vmatmul.mubr.msk.bf16.vlgmr.msra.gmra.mxu0 %vm1625_vm3, %v2108_v11 }
 0x535   : > { %3495 = vmatprep.mubr.msk.bf16.mxu0 %vm3719_vm2, %v3718_v17 }
 0x553   : > { %v2082_v16 = vpop.xlane.xlu0 %2081 }
 0x554   : > { %3650 = vrcp.f32 %v2082_v16 }
 0x557   : > { %v1324_v13 = vpop.permute.xlu0 %1323 }
 0x558   : > { %v1413_v19 = vcombine.low %v1324_v13, %v1332_v15  ;;  %v1414_v20 = vcombine.high %v1324_v13, %v1332_v15 }
 0x55a   : > { %v1421_v41 = vrot.slane %v1413_v19, %v3939_v55  ;;  %v1428_v23 = vrot.slane %v1414_v20, %v3939_v55 }
 0x55c   : > { %v1445_v40 = vcombine.low %v1421_v41, %v1437_v21  ;;  %v1446_v36 = vcombine.high %v1421_v41, %v1437_v21  ;;  %v1461_v25 = vcombine.low %v1428_v23, %v1444_v52  ;;  %v1462_v26 = vcombine.high %v1428_v23, %v1444_v52 }
 0x55e   : > { %v1453_v27 = vrot.slane %v1445_v40, %v3950_v63  ;;  %v1460_v29 = vrot.slane %v1446_v36, %v3950_v63  ;;  %v1469_v30 = vrot.slane %v1461_v25, %v3950_v63  ;;  %v1476_v48 = vrot.slane %v1462_v26, %v3950_v63  ;;  %v2088_v24 = vpop.xlane.xlu1 %2087 }
 0x55f   : > { %3652 = vrcp.f32 %v2088_v24 }
 0x560   : > { %v1549_v31 = vcombine.low %v1453_v27, %v1460_v29  ;;  %v3308_v32 = vcombine.high %v1453_v27, %v1460_v29  ;;  %v1565_v33 = vcombine.low %v1469_v30, %v1476_v48  ;;  %v3309_v34 = vcombine.high %v1469_v30, %v1476_v48 }
 0x561   : > { %v3651_v5 = vpop.eup %3650 }
 0x562   : > { %v1556_v42 = vrot.slane %v1549_v31, %v3939_v55  ;;  %v1564_v28 = vrot.slane %v3308_v32, %v3939_v55  ;;  %v1572_v39 = vrot.slane %v1565_v33, %v3939_v55  ;;  %v1580_v49 = vrot.slane %v3309_v34, %v3939_v55 }
 0x563   : > { %v2102_v9 = vmul.f32 %v3651_v5, %v4165_v22 }
 0x564   : > { %v1581_v51 = vcombine.low %v1556_v42, %v1564_v28  ;;  %v1597_v53 = vcombine.low %v1572_v39, %v1580_v49  ;;  %v1582_v57 = vcombine.high %v1556_v42, %v1564_v28  ;;  %v1598_v58 = vcombine.high %v1572_v39, %v1580_v49 }
 0x565   : > { %v2110_v46 = vpack.c.bf16 %v2102_v9, %v2102_v9 }
 0x566   : > { %v1589_v62 = vrot.slane %v1581_v51, %v3950_v63  ;;  %v1605_v2 = vrot.slane %v1597_v53, %v3950_v63  ;;  %v1596_v3 = vrot.slane %v1582_v57, %v3950_v63  ;;  %v1612_v4 = vrot.slane %v1598_v58, %v3950_v63 }
 0x568   : > { %v1613_v38 = vcombine.low %v1589_v62, %v1605_v2  ;;  %v1614_v8 = vcombine.high %v1589_v62, %v1605_v2  ;;  %v1615_v44 = vcombine.low %v1596_v3, %v1612_v4  ;;  %v1616_v0 = vcombine.high %v1596_v3, %v1612_v4 }
 0x56a   : > { %v1621_v59 = vpack.c.bf16 %v1613_v38, %v1613_v38  ;;  %v1622_v60 = vpack.c.bf16 %v1614_v8, %v1614_v8  ;;  %v1623_v1 = vpack.c.bf16 %v1615_v44, %v1615_v44  ;;  %v1624_v45 = vpack.c.bf16 %v1616_v0, %v1616_v0 }
 0x56c   : > { %v2302_v35 = vsel %vm2116_vm5, %v1621_v59, 0  ;;  %v2348_v43 = vsel %vm2116_vm5, %v1622_v60, 0  ;;  %v3653_v10 = vpop.eup %3652  ;;  %v2394_v47 = vsel %vm2116_vm5, %v1623_v1, 0  ;;  %v2440_v22 = vsel %vm2116_vm5, %v1624_v45, 0 }
 0x56d   : > { %3488 = vmatpush3.bf16.msra.mxu1 %v2302_v35  ;;  %3494 = vmatpush3.bf16.msra.mxu0 %v2348_v43  ;;  %v2104_v11 = vmul.f32 %v3653_v10, %v4177_v37 }
 0x56e   : > { %3499 = vmatprep.subr.bf16.mxu1 %v3718_v17  ;;  %3505 = vmatprep.subr.bf16.mxu0 %v3718_v17 }
 0x56f   : > { %v2112_v14 = vpack.c.bf16 %v2104_v11, %v2104_v11 }
 0x570   : > { %3490 = vmatmul.mubr.msk.bf16.vlgmr.msra.gmra.mxu1 %vm1625_vm3, %v2109_v50  ;;  %3496 = vmatmul.mubr.msk.bf16.vlgmr.msra.gmra.mxu0 %vm1625_vm3, %v2110_v46 }
 0x571   : > { %3500 = vmatpush3.bf16.msra.mxu1 %v2394_v47  ;;  %3506 = vmatpush3.bf16.msra.mxu0 %v2440_v22 }
 0x572   : > { %3507 = vmatprep.mubr.msk.bf16.mxu0 %vm3719_vm2, %v3718_v17  ;;  %3501 = vmatprep.mubr.msk.bf16.mxu1 %vm3719_vm2, %v3718_v17 }
 0x573   : > { %3511 = vmatprep.subr.bf16.mxu1 %v3718_v17  ;;  %3519 = vmatprep.subr.bf16.mxu0 %v3718_v17 }
 0x578   : > { %3508 = vmatmul.mubr.msk.bf16.vlgmr.msra.gmra.mxu0 %vm1625_vm3, %v2112_v14 }
 0x579   : > { %3523 = vmatprep.mubr.msk.bf16.mxu0 %vm3719_vm2, %v3718_v17 }
 0x588   : > { %v2085_v15 = vpop.xlane.xlu0 %2084 }
 0x589   : > { %3654 = vrcp.f32 %v2085_v15 }
 0x596   : > { %v3655_v6 = vpop.eup %3654 }
 0x597   : > { %v2103_v7 = vmul.f32 %v3655_v6, %v4189_v56 }
 0x599   : > { %v2111_v16 = vpack.c.bf16 %v2103_v7, %v2103_v7 }
 0x59b   : > { %3502 = vmatmul.mubr.msk.bf16.vlgmr.msra.gmra.mxu1 %vm1625_vm3, %v2111_v16 }
 0x59c   : > { %3515 = vmatprep.mubr.msk.bf16.mxu1 %vm3719_vm2, %v3718_v17 }
 0x5e4   : > { %v2154_v37 = vpop.f32.mrf.mxu1 }
 0x5e6   : > { %v3467_v18 = vpop.f32.mrf.mxu1 }
 0x5e8   : > { %v2157_v12 = vpop.f32.mrf.mxu1 }
 0x5ea   : > { %v3468_v13 = vpop.f32.mrf.mxu1 }
 0x5ec   : > { %v2200_v19 = vpop.f32.mrf.mxu0  ;;  %v2246_v20 = vpop.f32.mrf.mxu1 }
 0x5ed   : > { %v2482_v21 = vcombine.low %v2154_v37, %v2246_v20  ;;  %v2483_v52 = vcombine.high %v2154_v37, %v2246_v20 }
 0x5ee   : > { %v3473_v41 = vpop.f32.mrf.mxu0  ;;  %v3479_v23 = vpop.f32.mrf.mxu1 }
 0x5ef   : > { %v2490_v48 = vrot.slane %v2482_v21, %v3939_v55  ;;  %v2497_v24 = vrot.slane %v2483_v52, %v3939_v55 }
 0x5f0   : > { %v2203_v40 = vpop.f32.mrf.mxu0  ;;  %v2249_v36 = vpop.f32.mrf.mxu1 }
 0x5f2   : > { %v3474_v25 = vpop.f32.mrf.mxu0  ;;  %v3480_v56 = vpop.f32.mrf.mxu1 }
 0x5f4   : > { %v2292_v26 = vpop.f32.mrf.mxu0 }
 0x5f5   : > { %v2498_v27 = vcombine.low %v2200_v19, %v2292_v26  ;;  %v2499_v29 = vcombine.high %v2200_v19, %v2292_v26 }
 0x5f6   : > { %v3485_v30 = vpop.f32.mrf.mxu0 }
 0x5f7   : > { %v2506_v31 = vrot.slane %v2498_v27, %v3939_v55  ;;  %v2513_v32 = vrot.slane %v2499_v29, %v3939_v55 }
 0x5f8   : > { %v2295_v33 = vpop.f32.mrf.mxu0 }
 0x5f9   : > { %v2514_v34 = vcombine.low %v2490_v48, %v2506_v31  ;;  %v2515_v42 = vcombine.high %v2490_v48, %v2506_v31  ;;  %v2530_v28 = vcombine.low %v2497_v24, %v2513_v32  ;;  %v2531_v39 = vcombine.high %v2497_v24, %v2513_v32 }
 0x5fa   : > { %v3486_v49 = vpop.f32.mrf.mxu0 }
 0x5fb   : > { %v2522_v51 = vrot.slane %v2514_v34, %v3950_v63  ;;  %v2529_v53 = vrot.slane %v2515_v42, %v3950_v63  ;;  %v2538_v57 = vrot.slane %v2530_v28, %v3950_v63  ;;  %v2545_v58 = vrot.slane %v2531_v39, %v3950_v63  ;;  %v3608_v49 = vld [vmem:[%s3839_s25 + $0x8] sm:$0xff]  }
 0x5fc   : > { %3512 = vmatpush3.bf16.msra.mxu1 %v3608_v49 }
 0x5fd   : > { %v2618_v54 = vcombine.low %v2522_v51, %v2529_v53  ;;  %v3326_v62 = vcombine.high %v2522_v51, %v2529_v53  ;;  %v2634_v2 = vcombine.low %v2538_v57, %v2545_v58  ;;  %v3327_v3 = vcombine.high %v2538_v57, %v2545_v58  ;;  %3513 = vmatprep.subr.bf16.mxu1 %v3718_v17 }
 0x5ff   : > { %v2625_v4 = vrot.slane %v2618_v54, %v3939_v55  ;;  %v2633_v5 = vrot.slane %v3326_v62, %v3939_v55  ;;  %v2641_v38 = vrot.slane %v2634_v2, %v3939_v55  ;;  %v2649_v8 = vrot.slane %v3327_v3, %v3939_v55 }
 0x601   : > { %v2651_v44 = vcombine.high %v2625_v4, %v2633_v5  ;;  %v2667_v0 = vcombine.high %v2641_v38, %v2649_v8  ;;  %v2650_v59 = vcombine.low %v2625_v4, %v2633_v5  ;;  %v2666_v60 = vcombine.low %v2641_v38, %v2649_v8  ;;  %v3609_v4 = vld [vmem:[%s3839_s25] sm:$0xff]   ;;  %s3728_s25 = smov 8  }
 0x602   : > { %3514 = vmatpush3.bf16.msra.mxu1 %v3609_v4 }
 0x603   : > { %v4266_v61 = vrot.slane %v2651_v44, %v3950_v63  ;;  %v4269_v9 = vrot.slane %v2667_v0, %v3950_v63  ;;  %v4272_v35 = vrot.slane %v2650_v59, %v3950_v63  ;;  %v4275_v43 = vrot.slane %v2666_v60, %v3950_v63  ;;  %3527 = vmatprep.subr.bf16.mxu1 %v3718_v17 }
 0x605   : > { %v2684_v1 = vcombine.low %v4266_v61, %v4269_v9  ;;  %v2682_v45 = vcombine.low %v4272_v35, %v4275_v43  ;;  %v2683_v10 = vcombine.high %v4272_v35, %v4275_v43  ;;  %v2685_v50 = vcombine.high %v4266_v61, %v4269_v9  ;;  %v3330_v35 = vld [vmem:[%s4431_s21] ss:$0 sm:$0xff] }
 0x630   : > { %v2338_v46 = vpop.f32.mrf.mxu1  ;;  %v2384_v47 = vpop.f32.mrf.mxu0 }
 0x632   : > { %v3491_v22 = vpop.f32.mrf.mxu1  ;;  %v3497_v11 = vpop.f32.mrf.mxu0 }
 0x634   : > { %v2341_v14 = vpop.f32.mrf.mxu1  ;;  %v2387_v15 = vpop.f32.mrf.mxu0 }
 0x636   : > { %v3492_v6 = vpop.f32.mrf.mxu1  ;;  %v3498_v7 = vpop.f32.mrf.mxu0 }
 0x638   : > { %v2476_v16 = vpop.f32.mrf.mxu0 }
 0x639   : > { %v2566_v13 = vcombine.low %v2384_v47, %v2476_v16  ;;  %v2567_v19 = vcombine.high %v2384_v47, %v2476_v16 }
 0x63a   : > { %v3509_v37 = vpop.f32.mrf.mxu0 }
 0x63b   : > { %v2574_v23 = vrot.slane %v2566_v13, %v3939_v55  ;;  %v2581_v40 = vrot.slane %v2567_v19, %v3939_v55 }
 0x63c   : > { %v2479_v18 = vpop.f32.mrf.mxu0 }
 0x63e   : > { %v3510_v12 = vpop.f32.mrf.mxu0 }
 0x65b   : > { %v2430_v20 = vpop.f32.mrf.mxu1 }
 0x65c   : > { %v2550_v21 = vcombine.low %v2338_v46, %v2430_v20  ;;  %v2551_v52 = vcombine.high %v2338_v46, %v2430_v20  ;;  %v3664_v20 = vld [vmem:[#allocation2] sm:$0xff] }
 0x65d   : > { %v3503_v41 = vpop.f32.mrf.mxu1 }
 0x65e   : > { %v2558_v36 = vrot.slane %v2550_v21, %v3939_v55  ;;  %v2565_v25 = vrot.slane %v2551_v52, %v3939_v55 }
 0x65f   : > { %v2433_v56 = vpop.f32.mrf.mxu1 }
 0x660   : > { %v2582_v26 = vcombine.low %v2558_v36, %v2574_v23  ;;  %v2583_v27 = vcombine.high %v2558_v36, %v2574_v23  ;;  %v2598_v29 = vcombine.low %v2565_v25, %v2581_v40  ;;  %v2599_v30 = vcombine.high %v2565_v25, %v2581_v40  ;;  %v3665_v36 = vld [vmem:[#allocation2 + $0x8] sm:$0xff] }
 0x661   : > { %v3504_v48 = vpop.f32.mrf.mxu1 }
 0x662   : > { %v2590_v24 = vrot.slane %v2582_v26, %v3950_v63  ;;  %v2597_v31 = vrot.slane %v2583_v27, %v3950_v63  ;;  %v2606_v32 = vrot.slane %v2598_v29, %v3950_v63  ;;  %v2613_v33 = vrot.slane %v2599_v30, %v3950_v63 }
 0x664   : > { %v2686_v34 = vcombine.low %v2590_v24, %v2597_v31  ;;  %v3328_v42 = vcombine.high %v2590_v24, %v2597_v31  ;;  %v2702_v28 = vcombine.low %v2606_v32, %v2613_v33  ;;  %v3329_v39 = vcombine.high %v2606_v32, %v2613_v33 }
 0x666   : > { %v2693_v51 = vrot.slane %v2686_v34, %v3939_v55  ;;  %v2701_v53 = vrot.slane %v3328_v42, %v3939_v55  ;;  %v2709_v57 = vrot.slane %v2702_v28, %v3939_v55  ;;  %v2717_v58 = vrot.slane %v3329_v39, %v3939_v55  ;;  %v3610_v42 = vld [vmem:[%s3852_s18 + $0x8] sm:$0xff]   ;;  %v3611_v28 = vld [vmem:[%s3852_s18] sm:$0xff]   ;;  %s4432_s18 = scalar_lea.vmem %s4410_s6, %s3816_s26 }
 0x667   : > { %3520 = vmatpush3.bf16.msra.mxu0 %v3610_v42 }
 0x668   : > { %v2719_v54 = vcombine.high %v2693_v51, %v2701_v53  ;;  %v2735_v62 = vcombine.high %v2709_v57, %v2717_v58  ;;  %v2718_v2 = vcombine.low %v2693_v51, %v2701_v53  ;;  %v2734_v3 = vcombine.low %v2709_v57, %v2717_v58  ;;  %3521 = vmatprep.subr.bf16.mxu0 %v3718_v17 }
 0x66a   : > { %v2733_v5 = vrot.slane %v2719_v54, %v3950_v63  ;;  %v2749_v38 = vrot.slane %v2735_v62, %v3950_v63  ;;  %v2726_v8 = vrot.slane %v2718_v2, %v3950_v63  ;;  %v2742_v44 = vrot.slane %v2734_v3, %v3950_v63  ;;  %v3334_v2 = vld [vmem:[%s4432_s18] ss:$0 sm:$0xff] }
 0x66b   : > { %3522 = vmatpush3.bf16.msra.mxu0 %v3611_v28 }
 0x66c   : > { %v2752_v55 = vcombine.low %v2733_v5, %v2749_v38  ;;  %v2751_v0 = vcombine.high %v2726_v8, %v2742_v44  ;;  %v2750_v59 = vcombine.low %v2726_v8, %v2742_v44  ;;  %v2753_v47 = vcombine.high %v2733_v5, %v2749_v38  ;;  %v3335_v38 = vld [vmem:[%s580_s12] ss:$0 sm:$0xff] }
 0x66e   : > { %v3596_v60 = vpack.i.bf16 %v2752_v55, %v2684_v1  ;;  %v3591_v46 = vpack.i.bf16 %v2751_v0, %v2683_v10  ;;  %v3601_v22 = vpack.i.bf16 %v2753_v47, %v2685_v50  ;;  %v3615_v47 = vld [vmem:[%s3866_s30 + $0x20] sm:$0xff]  }
 0x670   : > { %3597 = vrot.lane.b32.xlu1 %v3596_v60, %s3727_s13  ;;  %3592 = vrot.lane.b32.xlu0 %v3591_v46, %s3728_s25  ;;  %v3613_v60 = vld [vmem:[%s3866_s30 + $0x30] sm:$0xff]   ;;  %v3614_v46 = vld [vmem:[%s3866_s30 + $0x28] sm:$0xff]  }
 0x674   : > { %3602 = vrot.lane.b32.xlu0 %v3601_v22, %s3729_s15  ;;  %v3616_v22 = vld [vmem:[%s3866_s30 + $0x18] sm:$0xff]  }
 0x6e2   : > { %v3598_v63 = vpop.permute.xlu1 %3597  ;;  %v3593_v11 = vpop.permute.xlu0 %3592 }
 0x6e3   : > { %v3595_v14 = vunpack.i.h.bf16 %v3593_v11  ;;  %v3594_v15 = vunpack.i.l.bf16 %v3593_v11  ;;  %v3600_v6 = vunpack.i.h.bf16 %v3598_v63  ;;  %v3599_v1 = vunpack.i.l.bf16 %v3598_v63  ;;  %v3617_v63 = vld [vmem:[%s3866_s30 + $0x10] sm:$0xff]   ;;  %v3618_v11 = vld [vmem:[%s3866_s30 + $0x8] sm:$0xff]  }
 0x6e5   : > { %v2778_v10 = vsel %vm1625_vm3, %v2682_v45, %v3594_v15  ;;  %v2779_v7 = vsel %vm1625_vm3, %v2750_v59, %v3595_v14  ;;  %v3612_v59 = vld [vmem:[%s3866_s30 + $0x38] sm:$0xff]   ;;  %v3619_v14 = vld [vmem:[%s3866_s30] sm:$0xff]  }
 0x6e6   : > { %v3603_v61 = vpop.permute.xlu0 %3602  ;;  %v2781_v16 = vsel %vm2780_vm6, %v2778_v10, %v3599_v1  ;;  %v2782_v37 = vsel %vm2780_vm6, %v2779_v7, %v3600_v6  ;;  %v3336_v15 = vld [vmem:[%s588_s3] ss:$0 sm:$0xff]  ;;  %s4433_s3 = sld [smem:[#allocation6_spill]] }
 0x6e7   : > { %v3605_v9 = vunpack.i.h.bf16 %v3603_v61  ;;  %v3604_v50 = vunpack.i.l.bf16 %v3603_v61 }
 0x6e9   : > { %v2784_v18 = vsel %vm2783_vm7, %v2781_v16, %v3604_v50  ;;  %v2785_v12 = vsel %vm2783_vm7, %v2782_v37, %v3605_v9 }
 0x6ea   : > { %v2786_v13 = vpack.c.bf16 %v2785_v12, %v2784_v18 }
 0x6ec   : > { %3516 = vmatmul.mubr.msk.bf16.vlgmr.msra.gmra.mxu1 %vm612_vm1, %v2786_v13  ;;  %s4434_s14 = sadd.s32 4294967295, %s4433_s3  }
 0x6ed   : > { %3543 = vmatprep.mubr.msk.bf16.mxu1 %vm3719_vm2, %v3718_v17  ;;  %3528 = vmatpush3.bf16.msra.mxu1 %v3612_v59  ;;  %p4377_p6 = scmp.eq.s32.totalorder %s4434_s14, 1 }
 0x6ee   : > { %3529 = vmatprep.subr.bf16.mxu1 %v3718_v17 }
 0x6f1   : > { %3530 = vmatpush3.bf16.msra.mxu1 %v3613_v60 }
 0x6f2   : > { %3531 = vmatprep.subr.bf16.mxu1 %v3718_v17 }
 0x6f5   : > { %3532 = vmatpush3.bf16.msra.mxu1 %v3614_v46 }
 0x6f6   : > { %3533 = vmatprep.subr.bf16.mxu1 %v3718_v17 }
 0x6f9   : > { %3534 = vmatpush3.bf16.msra.mxu1 %v3615_v47 }
 0x6fa   : > { %3535 = vmatprep.subr.bf16.mxu1 %v3718_v17 }
 0x6fd   : > { %3536 = vmatpush3.bf16.msra.mxu1 %v3616_v22 }
 0x6fe   : > { %3537 = vmatprep.subr.bf16.mxu1 %v3718_v17 }
 0x701   : > { %3538 = vmatpush3.bf16.msra.mxu1 %v3617_v63 }
 0x702   : > { %3539 = vmatprep.subr.bf16.mxu1 %v3718_v17 }
 0x705   : > { %3540 = vmatpush3.bf16.msra.mxu1 %v3618_v11 }
 0x706   : > { %3541 = vmatprep.subr.bf16.mxu1 %v3718_v17 }
 0x709   : > { %3542 = vmatpush3.bf16.msra.mxu1 %v3619_v14 }
 0x7ac   : > { %v2847_v43 = vpop.f32.mrf.mxu1 }
 0x7ad   : > { %v2848_v45 = vadd.f32 %v3330_v35, %v2847_v43 }
 0x7ae   : > { %v3517_v19 = vpop.f32.mrf.mxu1 }
 0x7af   : > { %v4322_v21 = vadd.f32 %v3664_v20, %v2848_v45 }
 0x7b0   : > { %v2850_v52 = vpop.f32.mrf.mxu1 }
 0x7b1   : > { %v2851_v41 = vadd.f32 %v3330_v35, %v2850_v52  ;;  %v2858_v23 = vsel %vm612_vm1, %v4322_v21, 0.0 }
 0x7b2   : > { %2859 = vadd.xlane.f32.xlu1 %v2858_v23  ;;  %v3518_v40 = vpop.f32.mrf.mxu1 }
 0x7b3   : > { %v4326_v25 = vadd.f32 %v3665_v36, %v2851_v41 }
 0x7b5   : > { %v2861_v56 = vsel %vm612_vm1, %v4326_v25, 0.0 }
 0x7b6   : > { %2862 = vadd.xlane.f32.xlu0 %v2861_v56 }
 0x83b   : > { %v2860_v26 = vpop.xlane.xlu1 %2859 }
 0x83c   : > { %v2864_v27 = vmul.f32 0.03125, %v2860_v26 }
 0x83e   : > { %v2866_v29 = vsub.f32 %v4322_v21, %v2864_v27  ;;  %v3340_v27 = vld [vmem:[%s596_s23] ss:$0 sm:$0xff]  ;;  %s3666_s23 = scalar_lea.vmem %s3113_s29, 256 }
 0x83f   : > { %v2863_v30 = vpop.xlane.xlu0 %2862  ;;  %p3667_p7 = scmp.ne.s32.totalorder %s3113_s29, %s3666_s23  ;;  %p3674_p11 = scmp.lt.s32.totalorder %s3666_s23, %s3666_s23 }
 0x840   : > { %v2865_v48 = vmul.f32 0.03125, %v2863_v30  ;;  %v2868_v24 = vmul.f32 %v2866_v29, %v2866_v29 }
 0x841   : > { %p3668_p8 = pnand %p3667_p7, %p4377_p6  ;;  %p3675_p12 = por %p3674_p11, %p3673_p10 }
 0x842   : > { %v2867_v31 = vsub.f32 %v4326_v25, %v2865_v48  ;;  %v2870_v32 = vsel %vm612_vm1, %v2868_v24, 0.0 }
 0x843   : > { %2871 = vadd.xlane.f32.xlu0 %v2870_v32  ;;  %p3669_p9 = pneg %p3668_p8 }
 0x844   : > { %v2869_v33 = vmul.f32 %v2867_v31, %v2867_v31 }
 0x845   : > { %p3676_p13 = pnand %p3675_p12, %p3669_p9 }
 0x846   : > { %v2873_v34 = vsel %vm612_vm1, %v2869_v33, 0.0 }
 0x847   : > { %2874 = vadd.xlane.f32.xlu0 %v2873_v34 }
 0x8cc   : > { %v2872_v39 = vpop.xlane.xlu0 %2871 }
 0x8cd   : > { %v2876_v49 = vmul.f32 0.03125, %v2872_v39 }
 0x8cf   : > { %v2878_v51 = vadd.f32 1e-05, %v2876_v49 }
 0x8d0   : > { %v2875_v53 = vpop.xlane.xlu0 %2874 }
 0x8d1   : > { %3656 = vrsqrt.f32 %v2878_v51  ;;  %v2877_v57 = vmul.f32 0.03125, %v2875_v53 }
 0x8d3   : > { %v2879_v58 = vadd.f32 1e-05, %v2877_v57 }
 0x8d5   : > { %3658 = vrsqrt.f32 %v2879_v58 }
 0x8de   : > { %v3657_v54 = vpop.eup %3656 }
 0x8df   : > { %v2882_v62 = vmul.f32 %v3657_v54, %v2866_v29 }
 0x8e1   : > { %v2890_v5 = vmul.f32 %v3334_v2, %v2882_v62 }
 0x8e2   : > { %v3659_v3 = vpop.eup %3658 }
 0x8e3   : > { %v2883_v4 = vmul.f32 %v3659_v3, %v2867_v31  ;;  %v2898_v44 = vadd.f32 %v3335_v38, %v2890_v5 }
 0x8e5   : > { %v2891_v8 = vmul.f32 %v3334_v2, %v2883_v4 }
 0x8e7   : > { %v2899_v55 = vadd.f32 %v3335_v38, %v2891_v8 }
 0x8e9   : > { %v2900_v0 = vpack.c.bf16 %v2899_v55, %v2898_v44 }
 0x8eb   : > { %3524 = vmatmul.mubr.msk.bf16.vlgmr.msra.gmra.mxu0 %vm612_vm1, %v2900_v0 }
 0x9ab   : > { %v2961_v6 = vpop.f32.mrf.mxu0 }
 0x9ac   : > { %v2962_v1 = vadd.f32 %v3336_v15, %v2961_v6 }
 0x9ad   : > { %v3525_v10 = vpop.f32.mrf.mxu0 }
 0x9ae   : > { %v2970_v7 = vmul.f32 0.044715, %v2962_v1  ;;  %v2968_v41 = vmul.f32 0.5, %v2962_v1 }
 0x9af   : > { %v2964_v61 = vpop.f32.mrf.mxu0 }
 0x9b0   : > { %v2972_v9 = vmul.f32 %v2970_v7, %v2962_v1  ;;  %v2965_v50 = vadd.f32 %v3336_v15, %v2964_v61 }
 0x9b1   : > { %v3526_v16 = vpop.f32.mrf.mxu0 }
 0x9b2   : > { %v2974_v37 = vmul.f32 %v2972_v9, %v2962_v1  ;;  %v2971_v18 = vmul.f32 0.044715, %v2965_v50  ;;  %v2969_v23 = vmul.f32 0.5, %v2965_v50 }
 0x9b4   : > { %v2976_v12 = vadd.f32 %v2974_v37, %v2962_v1  ;;  %v2973_v13 = vmul.f32 %v2971_v18, %v2965_v50 }
 0x9b6   : > { %v2978_v35 = vmul.f32 0.7978845, %v2976_v12  ;;  %v2975_v17 = vmul.f32 %v2973_v13, %v2965_v50 }
 0x9b8   : > { %3660 = vtanh.f32 %v2978_v35  ;;  %v2977_v43 = vadd.f32 %v2975_v17, %v2965_v50 }
 0x9ba   : > { %v2979_v45 = vmul.f32 0.7978845, %v2977_v43 }
 0x9bc   : > { %3662 = vtanh.f32 %v2979_v45 }
 0x9c5   : > { %v3661_v19 = vpop.eup %3660 }
 0x9c6   : > { %v2982_v20 = vadd.f32 1.0, %v3661_v19 }
 0x9c8   : > { %v2984_v36 = vmul.f32 %v2982_v20, %v2968_v41 }
 0x9c9   : > { %v3663_v52 = vpop.eup %3662 }
 0x9ca   : > { %v2983_v40 = vadd.f32 1.0, %v3663_v52 }
 0x9cc   : > { %v2985_v56 = vmul.f32 %v2983_v40, %v2969_v23 }
 0x9ce   : > { %v2986_v26 = vpack.c.bf16 %v2985_v56, %v2984_v36 }
 0x9d0   : > { %3544 = vmatmul.mubr.bf16.vlgmr.msra.gmra.mxu1 %v2986_v26 }
 0xa90   : > { %v3092_v29 = vpop.f32.mrf.mxu1 }
 0xa91   : > { %v3093_v30 = vadd.f32 %v3340_v27, %v3092_v29 }
 0xa92   : > { %v3545_v48 = vpop.f32.mrf.mxu1 }
 0xa93   : > { %v3099_v24 = vadd.f32 %v3093_v30, %v4322_v21 }
 0xa94   : > { %v3095_v31 = vpop.f32.mrf.mxu1 }
 0xa95   : > { %3101 = vst.msk [vmem:[#allocation2] sm:$0xff] %vm612_vm1, %v3099_v24  ;;  %v3096_v32 = vadd.f32 %v3340_v27, %v3095_v31 }
 0xa96   : > { %v3546_v33 = vpop.f32.mrf.mxu1 }
 0xa97   : > { %v3100_v34 = vadd.f32 %v3096_v32, %v4326_v25 }
 0xa99   : > { %3102 = vst.msk [vmem:[#allocation2 + $0x8] sm:$0xff] %vm612_vm1, %v3100_v34 }
 0xa9a   : > { %3679 = shalt.err (!%p3676_p13)
}
 0xa9b   : > { %s3731_s26 = smov 128   ;;  %s4436_s4 = sld [smem:[#allocation10_spill]] }
 0xaa1   : > { %3548 = dma.vmem_to_hbm [thread:$0]  (%p4377_p6), %s3113_s29, 256, %s4436_s4, [#allocation3], %s3731_s26, %s3731_s26, %s3728_s25  }
 0xaa2   : > { %3703 = dma.done.wait (%p4377_p6), [#allocation3], 256  }
 0xaa3   : > { %3705 = vsyncadd (%p4377_p6), [#allocation3], 4294967040 }
 0xaa4 PF: > { %s4437_s21 = sld [smem:[#allocation6_spill]] }
 0xaa5   : > { %s4439_s22 = sld [smem:[#allocation7_spill]] }
 0xaaa   : > { %s23_s23 = sadd.s32 1, %s4437_s21   ;;  %s4438_s21 = sld [smem:[#allocation5_spill]] }
 0xaab   : > { %p20_p0 = scmp.ge.s32.totalorder %s23_s23, 4  }
 0xaad   :  { %22 = sbr.rel (!%p20_p0) target bundleno = 6 (0x6), region = 133 }
 0xab2   :  { %3128 = vsyncpa [#allocation3], 1 }
 0xab3   :  { %3130 = vsyncpa [#allocation3 + $0x1], 1 }

</bundles_post_ra>
